<compile_context>
chip_gen: v7x
topology: tpu7x:2x2x1
jax: 0.10.0
libtpu: 0.0.40
codegen_flags: <defaults>
</compile_context>

<pallas_src>
import functools

import jax
import jax.numpy as jnp
from jax.experimental import pallas as pl
from jax.experimental.pallas import tpu as pltpu

_BN_EPS = 1e-5


def mlp_block_kernel(x_ref, w_ref, p_ref, o_ref, acc_ref, *, n_valid):
    # x_ref:   (Np, tk)  bf16 activation tile (Np = batch padded to mult of 8)
    # w_ref:   (tn, tk)  bf16 weight tile (PyTorch (Dout, Din) layout)
    # p_ref:   (3, tn)   f32 packed [bias; gamma; beta]
    # o_ref:   (Np, tn)  output tile
    # acc_ref: (Np, tn)  f32 accumulator / epilogue staging (persists over K)
    k = pl.program_id(1)

    @pl.when(k == 0)
    def _init():
        acc_ref[...] = jnp.zeros_like(acc_ref)

    # x @ W^T with f32 accumulation (trans_b via dot_general dimension numbers;
    # avoids a wrapper-side HBM transpose of the weights).
    acc_ref[...] += jax.lax.dot_general(
        x_ref[...], w_ref[...],
        dimension_numbers=(((1,), (1,)), ((), ())),
        preferred_element_type=jnp.float32,
    )

    @pl.when(k == pl.num_programs(1) - 1)
    def _finalize():
        bias = p_ref[0:1, :]
        gamma = p_ref[1:2, :]
        beta = p_ref[2:3, :]

        n_pad = acc_ref.shape[0]
        masked = n_pad != n_valid  # static Python bool (shapes are static)

        # Linear bias + ReLU; stage result back into the VMEM scratch so the
        # two batch reductions below do not keep a second (Np, tn) f32 value
        # live in vregs.
        y = jnp.maximum(acc_ref[...] + bias, 0.0)
        if masked:
            row = jax.lax.broadcasted_iota(jnp.int32, (n_pad, 1), 0)
            valid = (row < n_valid).astype(jnp.float32)
            y = y * valid  # padded rows contribute 0 to the batch statistics
        acc_ref[...] = y

        inv_n = 1.0 / n_valid
        mean = jnp.sum(acc_ref[...], axis=0, keepdims=True) * inv_n

        # Two-pass (centered) variance -- avoids E[y^2]-mean^2 cancellation.
        acc_ref[...] = acc_ref[...] - mean
        centered = acc_ref[...]
        sq = centered * centered
        if masked:
            sq = sq * valid  # padded rows are (-mean) after centering; exclude
        var = jnp.sum(sq, axis=0, keepdims=True) * inv_n

        scale = gamma * jax.lax.rsqrt(var + _BN_EPS)  # fused gamma / std (EUP)

        # Dropout: inference mode -> identity.
        o_ref[...] = (centered * scale + beta).astype(o_ref.dtype)


def _round_up(x, m):
    return (x + m - 1) // m * m


def mlp_block(x, weight, bias, gamma, beta):
    """x: (N, Din); weight: (Dout, Din) (PyTorch layout); bias/gamma/beta: (Dout,)."""
    n, din = x.shape
    dout = weight.shape[0]
    out_dtype = x.dtype
    out_itemsize = jnp.dtype(out_dtype).itemsize

    # ---- lane / sublane padding ------------------------------------------
    din_p = _round_up(din, 128)
    dout_p = _round_up(dout, 128)
    n_pad = _round_up(n, 8)

    # ---- VMEM budget (chip aware) ----------------------------------------
    try:
        vmem_cap = int(pltpu.get_tpu_info().vmem_capacity_bytes)
    except Exception:  # pragma: no cover - conservative fallback
        vmem_cap = 64 * 1024 * 1024
    budget = int(0.8 * (vmem_cap - (4 << 20)))

    def footprint(tk_, tn_):
        # double-buffered input/output tiles + resident f32 accumulator
        return (2 * n_pad * tk_ * 2              # x tiles (bf16)
                + 2 * tn_ * tk_ * 2              # W tiles (bf16)
                + 2 * 8 * tn_ * 4                # packed params (sublane-padded)
                + 2 * n_pad * tn_ * out_itemsize  # output tiles
                + n_pad * tn_ * 4)               # f32 accumulator / staging

    # ---- tile selection: prefer the fewest grid steps that fit VMEM -------
    def _cands(full, extras):
        cs = {full}
        for c in extras:
            if c < full and full % c == 0:
                cs.add(c)
        return sorted(cs, reverse=True)

    tk_cands = _cands(din_p, (2048, 1536, 1024, 896, 768, 640, 512, 384, 256, 128))
    tn_cands = _cands(dout_p, (1024, 768, 512, 384, 256, 128))

    best = None
    for tn_ in tn_cands:
        for tk_ in tk_cands:
            fp = footprint(tk_, tn_)
            fits = fp <= budget
            steps = (dout_p // tn_) * (din_p // tk_)
            key = (not fits,
                   steps if fits else fp,        # fewest steps; else smallest fp
                   0 if tk_ == din_p else 1,     # prefer x fetched exactly once
                   -tn_, -tk_)                   # then widest lanes / deepest K
            if best is None or key < best[0]:
                best = (key, tk_, tn_)
    _, tk, tn = best

    fp = footprint(tk, tn)
    vmem_limit = int(min(max(fp + (4 << 20), 16 << 20), vmem_cap - (2 << 20)))

    # ---- operand prep (bf16 MXU inputs, f32 params) ------------------------
    x_b = x.astype(jnp.bfloat16)
    if (n_pad, din_p) != (n, din):
        x_b = jnp.pad(x_b, ((0, n_pad - n), (0, din_p - din)))

    w_b = weight.astype(jnp.bfloat16)                      # keep (Dout, Din) layout
    if (dout_p, din_p) != (dout, din):
        w_b = jnp.pad(w_b, ((0, dout_p - dout), (0, din_p - din)))

    params = jnp.stack([bias, gamma, beta]).astype(jnp.float32)   # (3, Dout)
    if dout_p != dout:
        params = jnp.pad(params, ((0, 0), (0, dout_p - dout)))

    grid = (dout_p // tn, din_p // tk)   # (parallel Dout, arbitrary K reduction)

    x_reads = 1 if tk == din_p else (dout_p // tn)
    cost = pl.CostEstimate(
        flops=2 * n_pad * din_p * dout_p,
        transcendentals=dout_p,                                     # rsqrt per feature
        bytes_accessed=int(n_pad * din_p * 2 * x_reads
                           + din_p * dout_p * 2
                           + 3 * dout_p * 4
                           + n_pad * dout_p * out_itemsize),
    )

    kernel = functools.partial(mlp_block_kernel, n_valid=n)

    out_padded = pl.pallas_call(
        kernel,
        out_shape=jax.ShapeDtypeStruct((n_pad, dout_p), out_dtype),
        grid_spec=pltpu.PrefetchScalarGridSpec(
            num_scalar_prefetch=0,
            grid=grid,
            in_specs=[
                pl.BlockSpec((n_pad, tk), lambda j, k: (0, k)),   # x
                pl.BlockSpec((tn, tk), lambda j, k: (j, k)),      # W (Dout, Din)
                pl.BlockSpec((3, tn), lambda j, k: (0, j)),       # bias/gamma/beta
            ],
            out_specs=pl.BlockSpec((n_pad, tn), lambda j, k: (0, j)),
            scratch_shapes=[pltpu.VMEM((n_pad, tn), jnp.float32)],
        ),
        compiler_params=pltpu.CompilerParams(
            dimension_semantics=("parallel", "arbitrary"),
            vmem_limit_bytes=vmem_limit,
        ),
        cost_estimate=cost,
    )(x_b, w_b, params)

    if (n_pad, dout_p) != (n, dout):
        out_padded = out_padded[:n, :dout]
    return out_padded


def reference(x, weight, bias, gamma, beta):
    y = x @ weight.T + bias
    y = jnp.maximum(y, 0.0)
    mean = jnp.mean(y, axis=0, keepdims=True)
    var = jnp.mean((y - mean) ** 2, axis=0, keepdims=True)
    y = (y - mean) / jnp.sqrt(var + _BN_EPS)
    return y * gamma + beta


def _make_inputs(key, n, din, dout):
    kx, kw, kb, kg, kbe = jax.random.split(key, 5)
    x = jax.random.normal(kx, (n, din), dtype=jnp.float32)
    bound = 1.0 / (din ** 0.5)
    weight = jax.random.uniform(kw, (dout, din), minval=-bound, maxval=bound,
                                dtype=jnp.float32)
    bias = jax.random.uniform(kb, (dout,), minval=-bound, maxval=bound,
                              dtype=jnp.float32)
    gamma = 1.0 + 0.1 * jax.random.normal(kg, (dout,), dtype=jnp.float32)
    beta = 0.1 * jax.random.normal(kbe, (dout,), dtype=jnp.float32)
    return x, weight, bias, gamma, beta


def _check(x, weight, bias, gamma, beta):
    out = jax.block_until_ready(mlp_block(x, weight, bias, gamma, beta))
    assert out.shape == (x.shape[0], weight.shape[0])

    # Tight check vs a reference fed the same bf16-rounded matmul inputs.
    ref_bf16 = reference(
        x.astype(jnp.bfloat16).astype(jnp.float32),
        weight.astype(jnp.bfloat16).astype(jnp.float32),
        bias, gamma, beta,
    )
    assert jnp.allclose(out, ref_bf16, atol=3e-3, rtol=3e-3), \
        "mismatch vs bf16-input reference"

    # Looser check vs the pure-f32 PyTorch-equivalent reference (bf16 MXU inputs).
    ref_f32 = reference(x, weight, bias, gamma, beta)
    assert jnp.allclose(out, ref_f32, atol=5e-2, rtol=5e-2), \
        "mismatch vs f32 reference"


if __name__ == "__main__":
    key = jax.random.PRNGKey(0)
    k1, k2 = jax.random.split(key)

    # Main case: multi-feature padding path (320 -> 384 lanes), single grid step
    # after the tk/tn fix (tk = 640, tn = 384).
    _check(*_make_inputs(k1, n=128, din=640, dout=320))

    # Batch not a multiple of 8 (exercises the masked BatchNorm-stats path).
    _check(*_make_inputs(k2, n=100, din=200, dout=112))

    print("KERNEL_OK")
</pallas_src>

<mosaic_0001>
module attributes {stable_mosaic.version = 11 : i64} {
  func.func @mlp_block_kernel(%arg0: i32, %arg1: i32, %arg2: memref<128x640xbf16, #tpu.memory_space<vmem>>, %arg3: memref<384x640xbf16, #tpu.memory_space<vmem>>, %arg4: memref<3x384xf32, #tpu.memory_space<vmem>>, %arg5: memref<128x384xf32, #tpu.memory_space<vmem>>, %arg6: memref<128x384xf32, #tpu.memory_space<vmem>>) attributes {dimension_semantics = [#tpu.dimension_semantics<parallel>, #tpu.dimension_semantics<arbitrary>], iteration_bounds = array<i64: 1, 1>, scalar_prefetch = 0 : i64, scratch_operands = 1 : i64, tpu.core_type = #tpu.core_type<tc>, window_params = [{transform_indices = @transform_0, window_bounds = array<i64: 128, 640>}, {transform_indices = @transform_1, window_bounds = array<i64: 384, 640>}, {transform_indices = @transform_2, window_bounds = array<i64: 3, 384>}, {transform_indices = @transform_3, window_bounds = array<i64: 128, 384>}]} {
    %c0_i32 = arith.constant 0 : i32
    %0 = arith.cmpi eq, %arg1, %c0_i32 : i32
    %1 = arith.extui %0 : i1 to i32
    %c0_i32_0 = arith.constant 0 : i32
    %2 = arith.cmpi ne, %1, %c0_i32_0 : i32
    scf.if %2 {
      %cst_10 = arith.constant 0.000000e+00 : f32
      %12 = vector.broadcast %cst_10 : f32 to vector<128x384xf32>
      %c0_11 = arith.constant 0 : index
      %c0_12 = arith.constant 0 : index
      %13 = vector.load %arg6[%c0_11, %c0_12] : memref<128x384xf32, #tpu.memory_space<vmem>>, vector<128x384xf32>
      tpu.vector_store %arg6[%c0_11, %c0_12], %12 {strides = array<i32>} : memref<128x384xf32, #tpu.memory_space<vmem>>, vector<128x384xf32>,
    } else {
    }
    %c0 = arith.constant 0 : index
    %c0_1 = arith.constant 0 : index
    %3 = vector.load %arg6[%c0, %c0_1] : memref<128x384xf32, #tpu.memory_space<vmem>>, vector<128x384xf32>
    %c0_2 = arith.constant 0 : index
    %c0_3 = arith.constant 0 : index
    %4 = vector.load %arg2[%c0_2, %c0_3] : memref<128x640xbf16, #tpu.memory_space<vmem>>, vector<128x640xbf16>
    %c0_4 = arith.constant 0 : index
    %c0_5 = arith.constant 0 : index
    %5 = vector.load %arg3[%c0_4, %c0_5] : memref<384x640xbf16, #tpu.memory_space<vmem>>, vector<384x640xbf16>
    %cst = arith.constant dense<0.000000e+00> : vector<128x384xf32>
    %6 = tpu.matmul %4, %5, %cst {dimension_numbers = #tpu.dot_dimension_numbers<[1], [1], [0], [0], [0, 0, 1, 0], [], []>} : vector<128x640xbf16>, vector<384x640xbf16>, vector<128x384xf32> -> vector<128x384xf32>
    %7 = arith.addf %3, %6 : vector<128x384xf32>
    %c0_6 = arith.constant 0 : index
    %c0_7 = arith.constant 0 : index
    %8 = vector.load %arg6[%c0_6, %c0_7] : memref<128x384xf32, #tpu.memory_space<vmem>>, vector<128x384xf32>
    tpu.vector_store %arg6[%c0_6, %c0_7], %7 {strides = array<i32>} : memref<128x384xf32, #tpu.memory_space<vmem>>, vector<128x384xf32>,
    %c0_i32_8 = arith.constant 0 : i32
    %9 = arith.cmpi eq, %arg1, %c0_i32_8 : i32
    %10 = arith.extui %9 : i1 to i32
    %c0_i32_9 = arith.constant 0 : i32
    %11 = arith.cmpi ne, %10, %c0_i32_9 : i32
    scf.if %11 {
      %c0_10 = arith.constant 0 : index
      %c0_11 = arith.constant 0 : index
      %12 = vector.load %arg4[%c0_10, %c0_11] : memref<3x384xf32, #tpu.memory_space<vmem>>, vector<1x384xf32>
      %c1 = arith.constant 1 : index
      %c0_12 = arith.constant 0 : index
      %13 = vector.load %arg4[%c1, %c0_12] : memref<3x384xf32, #tpu.memory_space<vmem>>, vector<1x384xf32>
      %c2 = arith.constant 2 : index
      %c0_13 = arith.constant 0 : index
      %14 = vector.load %arg4[%c2, %c0_13] : memref<3x384xf32, #tpu.memory_space<vmem>>, vector<1x384xf32>
      %c0_14 = arith.constant 0 : index
      %c0_15 = arith.constant 0 : index
      %15 = vector.load %arg6[%c0_14, %c0_15] : memref<128x384xf32, #tpu.memory_space<vmem>>, vector<128x384xf32>
      %16 = vector.broadcast %12 : vector<1x384xf32> to vector<128x384xf32>
      %17 = arith.addf %15, %16 : vector<128x384xf32>
      %cst_16 = arith.constant 0.000000e+00 : f32
      %18 = vector.broadcast %cst_16 : f32 to vector<128x384xf32>
      %19 = arith.maximumf %17, %18 : vector<128x384xf32>
      %c0_17 = arith.constant 0 : index
      %c0_18 = arith.constant 0 : index
      %20 = vector.load %arg6[%c0_17, %c0_18] : memref<128x384xf32, #tpu.memory_space<vmem>>, vector<128x384xf32>
      tpu.vector_store %arg6[%c0_17, %c0_18], %19 {strides = array<i32>} : memref<128x384xf32, #tpu.memory_space<vmem>>, vector<128x384xf32>,
      %c0_19 = arith.constant 0 : index
      %c0_20 = arith.constant 0 : index
      %21 = vector.load %arg6[%c0_19, %c0_20] : memref<128x384xf32, #tpu.memory_space<vmem>>, vector<128x384xf32>
      %cst_21 = arith.constant dense<0.000000e+00> : vector<384xf32>
      %22 = vector.multi_reduction <add>, %21, %cst_21 [0] : vector<128x384xf32> to vector<384xf32>
      %23 = vector.shape_cast %22 : vector<384xf32> to vector<1x384xf32>
      %cst_22 = arith.constant 7.812500e-03 : f32
      %24 = vector.broadcast %cst_22 : f32 to vector<1x384xf32>
      %25 = arith.mulf %23, %24 : vector<1x384xf32>
      %c0_23 = arith.constant 0 : index
      %c0_24 = arith.constant 0 : index
      %26 = vector.load %arg6[%c0_23, %c0_24] : memref<128x384xf32, #tpu.memory_space<vmem>>, vector<128x384xf32>
      %27 = vector.broadcast %25 : vector<1x384xf32> to vector<128x384xf32>
      %28 = arith.subf %26, %27 : vector<128x384xf32>
      %c0_25 = arith.constant 0 : index
      %c0_26 = arith.constant 0 : index
      %29 = vector.load %arg6[%c0_25, %c0_26] : memref<128x384xf32, #tpu.memory_space<vmem>>, vector<128x384xf32>
      tpu.vector_store %arg6[%c0_25, %c0_26], %28 {strides = array<i32>} : memref<128x384xf32, #tpu.memory_space<vmem>>, vector<128x384xf32>,
      %c0_27 = arith.constant 0 : index
      %c0_28 = arith.constant 0 : index
      %30 = vector.load %arg6[%c0_27, %c0_28] : memref<128x384xf32, #tpu.memory_space<vmem>>, vector<128x384xf32>
      %31 = arith.mulf %30, %30 : vector<128x384xf32>
      %cst_29 = arith.constant dense<0.000000e+00> : vector<384xf32>
      %32 = vector.multi_reduction <add>, %31, %cst_29 [0] : vector<128x384xf32> to vector<384xf32>
      %33 = vector.shape_cast %32 : vector<384xf32> to vector<1x384xf32>
      %cst_30 = arith.constant 7.812500e-03 : f32
      %34 = vector.broadcast %cst_30 : f32 to vector<1x384xf32>
      %35 = arith.mulf %33, %34 : vector<1x384xf32>
      %cst_31 = arith.constant 9.99999974E-6 : f32
      %36 = vector.broadcast %cst_31 : f32 to vector<1x384xf32>
      %37 = arith.addf %35, %36 : vector<1x384xf32>
      %38 = math.rsqrt %37 : vector<1x384xf32>
      %39 = arith.mulf %13, %38 : vector<1x384xf32>
      %40 = vector.broadcast %39 : vector<1x384xf32> to vector<128x384xf32>
      %41 = arith.mulf %30, %40 : vector<128x384xf32>
      %42 = vector.broadcast %14 : vector<1x384xf32> to vector<128x384xf32>
      %43 = arith.addf %41, %42 : vector<128x384xf32>
      %c0_32 = arith.constant 0 : index
      %c0_33 = arith.constant 0 : index
      %44 = vector.load %arg5[%c0_32, %c0_33] : memref<128x384xf32, #tpu.memory_space<vmem>>, vector<128x384xf32>
      tpu.vector_store %arg5[%c0_32, %c0_33], %43 {strides = array<i32>} : memref<128x384xf32, #tpu.memory_space<vmem>>, vector<128x384xf32>,
    } else {
    }
    return
  }
  func.func @transform_0(%arg0: i32, %arg1: i32) -> (i32, i32) {
    %c0_i32 = arith.constant 0 : i32
    %c0_i32_0 = arith.constant 0 : i32
    return %c0_i32, %arg1 : i32, i32
  }
  func.func @transform_1(%arg0: i32, %arg1: i32) -> (i32, i32) {
    %c0_i32 = arith.constant 0 : i32
    return %arg0, %arg1 : i32, i32
  }
  func.func @transform_2(%arg0: i32, %arg1: i32) -> (i32, i32) {
    %c0_i32 = arith.constant 0 : i32
    %c0_i32_0 = arith.constant 0 : i32
    return %c0_i32, %arg0 : i32, i32
  }
  func.func @transform_3(%arg0: i32, %arg1: i32) -> (i32, i32) {
    %c0_i32 = arith.constant 0 : i32
    %c0_i32_0 = arith.constant 0 : i32
    return %c0_i32, %arg0 : i32, i32
  }
}

</mosaic_0001>

<bundles_post_ra>
// kernel: tpu_custom_call.1
= control target key start
LH: loop header
LB: loop body
LE: loop exit
PB: predicated region body
PF: predicated region fallthrough
CT: control target
= control target key end

     0   :  { %8 = vsyncpa [#allocation4], 0  ;;  %s4459_s0 = inlined_call_operand.hbm [shape: bf16[128,640], index: 0, kind: input, shape index: {}]   ;;  %s4460_s1 = inlined_call_operand.hbm [shape: bf16[384,640], index: 1, kind: input, shape index: {}]   ;;  %s4461_s2 = inlined_call_operand.hbm [shape: f32[3,384], index: 2, kind: input, shape index: {}]   ;;  %s4462_s3 = inlined_call_operand.hbm [shape: f32[128,384], index: 3, kind: output, shape index: {}]  }
   0x1   :  { %9 = vsyncpa [#allocation7], 0 }
   0x2   :  { %10 = vsyncpa [#allocation5], 0  ;;  %s3390_s12 = smov [#allocation6]   ;;  %s3391_s14 = smov [#allocation3]  }
   0x3   :  { %s28_s13 = sshll.u32 %s3390_s12, 4  ;;  %s16_s15 = sshll.u32 %s3391_s14, 4  ;;  %s29_s13 = int_to_ptr.vmem [resolvable:$true] %s28_s13  ;;  %s3419_s15 = int_to_ptr.vmem [resolvable:$true] %s16_s15 }
   0x4   :  { %s3296_s18 = scalar_lea.hbm %s4460_s1, 15360 }
   0x5   :  { %p3297_p0 = scmp.ne.s32.totalorder %s4460_s1, %s3296_s18  ;;  %p3300_p1 = scmp.lt.u32.totalorder %s3296_s18, %s4460_s1 }
   0x7   :  { %p3302_p2 = pnand %p3300_p1, %p3297_p0 }
   0x9   :  { %3305 = shalt.err (!%p3302_p2)
}
   0xa   :  { %s3306_s23 = scalar_lea.vmem %s29_s13, 15360  ;;  %p3311_p4 = scmp.lt.s32.totalorder %s29_s13, %s29_s13 }
   0xb   :  { %p3307_p3 = scmp.ne.s32.totalorder %s29_s13, %s3306_s23  ;;  %p3312_p5 = scmp.lt.s32.totalorder %s3306_s23, %s3306_s23 }
   0xd   :  { %p3313_p6 = por %p3312_p5, %p3311_p4 }
   0xf   :  { %p3314_p7 = pnand %p3313_p6, %p3307_p3 }
  0x11   :  { %3317 = shalt.err (!%p3314_p7)
}
  0x12   :  { %s3392_s24 = smov 320   ;;  %s3393_s25 = smov 20  }
  0x13   :  { %34 = dma.hbm_to_vmem [thread:$0]  %s4460_s1, 15360, %s29_s13, [#allocation7], %s3392_s24, %s3392_s24, %s3393_s25  }
  0x14   :  { %s3318_s30 = scalar_lea.hbm %s4459_s0, 5120 }
  0x15   :  { %p3319_p8 = scmp.ne.s32.totalorder %s4459_s0, %s3318_s30  ;;  %p3322_p9 = scmp.lt.u32.totalorder %s3318_s30, %s4459_s0 }
  0x17   :  { %p3324_p10 = pnand %p3322_p9, %p3319_p8 }
  0x19   :  { %3327 = shalt.err (!%p3324_p10)
}
  0x1a   :  { %s3328_s8 = scalar_lea.vmem %s3419_s15, 5120  ;;  %p3333_p12 = scmp.lt.s32.totalorder %s3419_s15, %s3419_s15 }
  0x1b   :  { %p3329_p11 = scmp.ne.s32.totalorder %s3419_s15, %s3328_s8  ;;  %p3334_p13 = scmp.lt.s32.totalorder %s3328_s8, %s3328_s8 }
  0x1d   :  { %p3335_p0 = por %p3334_p13, %p3333_p12 }
  0x1f   :  { %p3336_p1 = pnand %p3335_p0, %p3329_p11 }
  0x21   :  { %3339 = shalt.err (!%p3336_p1)
}
  0x22   :  { %22 = dma.hbm_to_vmem [thread:$0]  %s4459_s0, 5120, %s3419_s15, [#allocation4], %s3392_s24, %s3392_s24, %s3393_s25  }
  0x23   :  { %s3394_s10 = smov [#allocation8]   ;;  %s3340_s14 = scalar_lea.hbm %s4461_s2, 192 }
  0x24   :  { %s41_s11 = sshll.u32 %s3394_s10, 4  ;;  %p3341_p2 = scmp.ne.s32.totalorder %s4461_s2, %s3340_s14  ;;  %s42_s11 = int_to_ptr.vmem [resolvable:$true] %s41_s11 }
  0x25   :  { %p3344_p3 = scmp.lt.u32.totalorder %s3340_s14, %s4461_s2 }
  0x27   :  { %p3346_p4 = pnand %p3344_p3, %p3341_p2 }
  0x29   :  { %3349 = shalt.err (!%p3346_p4)
}
  0x2a   :  { %s3350_s20 = scalar_lea.vmem %s42_s11, 192  ;;  %p3355_p6 = scmp.lt.s32.totalorder %s42_s11, %s42_s11 }
  0x2b   :  { %p3351_p5 = scmp.ne.s32.totalorder %s42_s11, %s3350_s20  ;;  %p3356_p7 = scmp.lt.s32.totalorder %s3350_s20, %s3350_s20 }
  0x2d   :  { %p3357_p8 = por %p3356_p7, %p3355_p6 }
  0x2f   :  { %p3358_p9 = pnand %p3357_p8, %p3351_p5 }
  0x31   :  { %3361 = shalt.err (!%p3358_p9)
}
  0x32   :  { %44 = dma.hbm_to_vmem [thread:$0]  %s4461_s2, 192, %s42_s11, [#allocation7]  }
  0x33   :  { %3384 = dma.done.wait [#allocation4], 5120  }
  0x34   :  { %3385 = vsyncadd [#allocation4], 4294962176 }
  0x35   :  { %3386 = dma.done.wait [#allocation7], 15552  }
  0x36   :  { %3387 = vsyncadd [#allocation7], 4294951744  ;;  %v3066_v0 = vld [vmem:[#allocation6 + $0x4] ss:$20 sps:$4 sm:$0xff]   ;;  %v3069_v2 = vld [vmem:[#allocation6] ss:$20 sps:$4 sm:$0xff]  }
  0x37   :  { %v3068_v1 = vld [vmem:[#allocation6 + $0x150] ss:$20 sps:$4 sm:$0xff]   ;;  %1179 = vmatprep.subr.bf16.mxu0 %v3066_v0  ;;  %v3071_v4 = vld [vmem:[#allocation6 + $0x2c] ss:$20 sps:$4 sm:$0xff]   ;;  %v3074_v6 = vld [vmem:[#allocation6 + $0x28] ss:$20 sps:$4 sm:$0xff]  }
  0x38   :  { %2881 = vmatprep.subr.bf16.mxu1 %v3068_v1  ;;  %v3070_v3 = vld [vmem:[#allocation6 + $0x10] ss:$20 sps:$4 sm:$0xff]   ;;  %1180 = vmatpush1.bf16.xpose.msra.mxu0 %v3069_v2  ;;  %v3073_v5 = vld [vmem:[#allocation6 + $0x178] ss:$20 sps:$4 sm:$0xff]   ;;  %v3076_v8 = vld [vmem:[#allocation6 + $0x54] ss:$20 sps:$4 sm:$0xff]  }
  0x39   :  { %2882 = vmatpush3.bf16.xpose.msra.mxu1 %v3070_v3  ;;  %1181 = vmatprep.subr.bf16.mxu0 %v3071_v4  ;;  %v3075_v7 = vld [vmem:[#allocation6 + $0x38] ss:$20 sps:$4 sm:$0xff]   ;;  %v3078_v9 = vld [vmem:[#allocation6 + $0x1a0] ss:$20 sps:$4 sm:$0xff]   ;;  %v3079_v10 = vld [vmem:[#allocation6 + $0x50] ss:$20 sps:$4 sm:$0xff]  }
  0x3a   :  { %2883 = vmatprep.subr.bf16.mxu1 %v3073_v5  ;;  %v3080_v11 = vld [vmem:[#allocation6 + $0x60] ss:$20 sps:$4 sm:$0xff]   ;;  %v3081_v12 = vld [vmem:[#allocation6 + $0x7c] ss:$20 sps:$4 sm:$0xff]   ;;  %v3084_v14 = vld [vmem:[#allocation6 + $0x78] ss:$20 sps:$4 sm:$0xff]  }
  0x3b   :  { %v3083_v13 = vld [vmem:[#allocation6 + $0x1c8] ss:$20 sps:$4 sm:$0xff]   ;;  %v3086_v16 = vld [vmem:[#allocation6 + $0xa4] ss:$20 sps:$4 sm:$0xff]   ;;  %v3089_v19 = vld [vmem:[#allocation6 + $0xa0] ss:$20 sps:$4 sm:$0xff]  }
  0x3c   :  { %v3085_v15 = vld [vmem:[#allocation6 + $0x88] ss:$20 sps:$4 sm:$0xff]   ;;  %v3088_v17 = vld [vmem:[#allocation6 + $0x1f0] ss:$20 sps:$4 sm:$0xff]   ;;  %v3091_v21 = vld [vmem:[#allocation6 + $0xcc] ss:$20 sps:$4 sm:$0xff]  }
  0x3d   :  { %v3462_v18 = vld [vmem:[#allocation3 + $0x10] ss:$20 sps:$4 sm:$0xff]   ;;  %v3093_v22 = vld [vmem:[#allocation6 + $0x218] ss:$20 sps:$4 sm:$0xff]   ;;  %v3094_v23 = vld [vmem:[#allocation6 + $0xc8] ss:$20 sps:$4 sm:$0xff]  }
  0x3e   :  { %2897 = vmatprep.mubr.bf16.mxu1 %v3462_v18  ;;  %v3090_v20 = vld [vmem:[#allocation6 + $0xb0] ss:$20 sps:$4 sm:$0xff]   ;;  %v3095_v24 = vld [vmem:[#allocation6 + $0xd8] ss:$20 sps:$4 sm:$0xff]   ;;  %v3096_v25 = vld [vmem:[#allocation6 + $0xf4] ss:$20 sps:$4 sm:$0xff]  }
  0x3f   :  { %v3098_v26 = vld [vmem:[#allocation6 + $0x240] ss:$20 sps:$4 sm:$0xff]   ;;  %v3099_v27 = vld [vmem:[#allocation6 + $0xf0] ss:$20 sps:$4 sm:$0xff]   ;;  %v3103_v30 = vld [vmem:[#allocation6 + $0x268] ss:$20 sps:$4 sm:$0xff]  }
  0x40   :  { %1182 = vmatpush1.bf16.xpose.msra.mxu0 %v3074_v6  ;;  %v3100_v28 = vld [vmem:[#allocation6 + $0x100] ss:$20 sps:$4 sm:$0xff]   ;;  %v3101_v29 = vld [vmem:[#allocation6 + $0x11c] ss:$20 sps:$4 sm:$0xff]   ;;  %v3104_v31 = vld [vmem:[#allocation6 + $0x118] ss:$20 sps:$4 sm:$0xff]  }
  0x41   :  { %2884 = vmatpush3.bf16.xpose.msra.mxu1 %v3075_v7  ;;  %1183 = vmatprep.subr.bf16.mxu0 %v3076_v8  ;;  %v3105_v32 = vld [vmem:[#allocation6 + $0x128] ss:$20 sps:$4 sm:$0xff]   ;;  %v3107_v33 = vld [vmem:[#allocation6 + $0x144] ss:$20 sps:$4 sm:$0xff]   ;;  %v3109_v36 = vld [vmem:[#allocation6 + $0x280] ss:$20 sps:$4 sm:$0xff]  }
  0x42   :  { %2885 = vmatprep.subr.bf16.mxu1 %v3078_v9  ;;  %v3465_v34 = vld [vmem:[#allocation3 + $0x4] ss:$20 sps:$4 sm:$0xff]   ;;  %v3112_v37 = vld [vmem:[#allocation6 + $0x140] ss:$20 sps:$4 sm:$0xff]   ;;  %v3116_v41 = vld [vmem:[#allocation6 + $0x2a8] ss:$20 sps:$4 sm:$0xff]  }
  0x43   :  { %v3111_v35 = vld [vmem:[#allocation6 + $0x284] ss:$20 sps:$4 sm:$0xff]   ;;  %1211 = vmatprep.mubr.bf16.mxu0 %v3465_v34  ;;  %v3114_v39 = vld [vmem:[#allocation6 + $0x16c] ss:$20 sps:$4 sm:$0xff]   ;;  %v3119_v42 = vld [vmem:[#allocation6 + $0x168] ss:$20 sps:$4 sm:$0xff]  }
  0x44   :  { %v3468_v38 = vld [vmem:[#allocation3 + $0x38] ss:$20 sps:$4 sm:$0xff]   ;;  %v3472_v43 = vld [vmem:[#allocation3 + $0x60] ss:$20 sps:$4 sm:$0xff]   ;;  %v3123_v46 = vld [vmem:[#allocation6 + $0x2d0] ss:$20 sps:$4 sm:$0xff]  }
  0x45   :  { %v3118_v40 = vld [vmem:[#allocation6 + $0x2ac] ss:$20 sps:$4 sm:$0xff]   ;;  %v3121_v44 = vld [vmem:[#allocation6 + $0x194] ss:$20 sps:$4 sm:$0xff]   ;;  %v3126_v47 = vld [vmem:[#allocation6 + $0x190] ss:$20 sps:$4 sm:$0xff]  }
  0x46   :  { %v3125_v45 = vld [vmem:[#allocation6 + $0x2d4] ss:$20 sps:$4 sm:$0xff]   ;;  %v3128_v49 = vld [vmem:[#allocation6 + $0x1bc] ss:$20 sps:$4 sm:$0xff]   ;;  %v3130_v51 = vld [vmem:[#allocation6 + $0x2f8] ss:$20 sps:$4 sm:$0xff]  }
  0x47   :  { %v3476_v48 = vld [vmem:[#allocation3 + $0x88] ss:$20 sps:$4 sm:$0xff]   ;;  %v3133_v52 = vld [vmem:[#allocation6 + $0x1b8] ss:$20 sps:$4 sm:$0xff]   ;;  %v3480_v53 = vld [vmem:[#allocation3 + $0xb0] ss:$20 sps:$4 sm:$0xff]  }
  0x48   :  { %1184 = vmatpush1.bf16.xpose.msra.mxu0 %v3079_v10  ;;  %v3132_v50 = vld [vmem:[#allocation6 + $0x2fc] ss:$20 sps:$4 sm:$0xff]   ;;  %v3135_v54 = vld [vmem:[#allocation6 + $0x1e4] ss:$20 sps:$4 sm:$0xff]   ;;  %v3140_v56 = vld [vmem:[#allocation6 + $0x1e0] ss:$20 sps:$4 sm:$0xff]  }
  0x49   :  { %2886 = vmatpush3.bf16.xpose.msra.mxu1 %v3080_v11  ;;  %1185 = vmatprep.subr.bf16.mxu0 %v3081_v12  ;;  %v3139_v55 = vld [vmem:[#allocation6 + $0x324] ss:$20 sps:$4 sm:$0xff]   ;;  %v3137_v57 = vld [vmem:[#allocation6 + $0x320] ss:$20 sps:$4 sm:$0xff]   ;;  %v3144_v61 = vld [vmem:[#allocation6 + $0x348] ss:$20 sps:$4 sm:$0xff]  }
  0x4a   :  { %2887 = vmatprep.subr.bf16.mxu1 %v3083_v13  ;;  %v3484_v58 = vld [vmem:[#allocation3 + $0xd8] ss:$20 sps:$4 sm:$0xff]   ;;  %v3147_v62 = vld [vmem:[#allocation6 + $0x208] ss:$20 sps:$4 sm:$0xff]   ;;  %v3488_v63 = vld [vmem:[#allocation3 + $0x100] ss:$20 sps:$4 sm:$0xff]  }
  0x4b   :  { %v3142_v59 = vld [vmem:[#allocation6 + $0x20c] ss:$20 sps:$4 sm:$0xff]   ;;  %v3149_v0 = vld [vmem:[#allocation6 + $0x234] ss:$20 sps:$4 sm:$0xff]   ;;  %v3151_v2 = vld [vmem:[#allocation6 + $0x370] ss:$20 sps:$4 sm:$0xff]  }
  0x4c   :  { %v3146_v60 = vld [vmem:[#allocation6 + $0x34c] ss:$20 sps:$4 sm:$0xff]   ;;  %v3153_v1 = vld [vmem:[#allocation6 + $0x374] ss:$20 sps:$4 sm:$0xff]   ;;  %v3154_v3 = vld [vmem:[#allocation6 + $0x230] ss:$20 sps:$4 sm:$0xff]  }
  0x4d   :  { %v3492_v4 = vld [vmem:[#allocation3 + $0x128] ss:$20 sps:$4 sm:$0xff]   ;;  %v3161_v7 = vld [vmem:[#allocation6 + $0x258] ss:$20 sps:$4 sm:$0xff]   ;;  %v3162_v11 = vld [vmem:[#allocation3] ss:$20 sps:$4 sm:$0xff]  }
  0x4e   :  { %v3156_v5 = vld [vmem:[#allocation6 + $0x25c] ss:$20 sps:$4 sm:$0xff]   ;;  %v3158_v8 = vld [vmem:[#allocation6 + $0x398] ss:$20 sps:$4 sm:$0xff]   ;;  %s3396_s2 = smov [#allocation9]  }
  0x4f   :  { %v3160_v6 = vld [vmem:[#allocation6 + $0x39c] ss:$20 sps:$4 sm:$0xff]   ;;  %v3167_v9 = vld [vmem:[#allocation6 + $0xc] ss:$20 sps:$4 sm:$0xff]   ;;  %s2708_s21 = sshll.u32 %s3396_s2, 4  ;;  %s4432_s21 = int_to_ptr.vmem [resolvable:$true] %s2708_s21 }
  0x50   :  { %1186 = vmatpush1.bf16.xpose.msra.mxu0 %v3084_v14  ;;  %v3170_v10 = vld [vmem:[#allocation6 + $0x28c] ss:$20 sps:$4 sm:$0xff]   ;;  %v3165_v12 = vld [vmem:[#allocation6 + $0x8] ss:$20 sps:$4 sm:$0xff]   ;;  %s3362_s22 = scalar_lea.vmem %s4432_s21, 6144  ;;  %p3367_p11 = scmp.lt.s32.totalorder %s4432_s21, %s4432_s21 }
  0x51   :  { %2888 = vmatpush3.bf16.xpose.msra.mxu1 %v3085_v15  ;;  %1187 = vmatprep.subr.bf16.mxu0 %v3086_v16  ;;  %v3168_v13 = vld [vmem:[#allocation6 + $0x288] ss:$20 sps:$4 sm:$0xff]   ;;  %v3171_v14 = vld [vmem:[#allocation3 + $0x2c] ss:$20 sps:$4 sm:$0xff]   ;;  %p3363_p10 = scmp.ne.s32.totalorder %s4432_s21, %s3362_s22  ;;  %p3368_p12 = scmp.lt.s32.totalorder %s3362_s22, %s3362_s22 }
  0x52   :  { %2889 = vmatprep.subr.bf16.mxu1 %v3088_v17  ;;  %v3175_v15 = vld [vmem:[#allocation6 + $0x34] ss:$20 sps:$4 sm:$0xff]   ;;  %v3173_v17 = vld [vmem:[#allocation6 + $0x30] ss:$20 sps:$4 sm:$0xff]  }
  0x53   :  { %v3179_v16 = vld [vmem:[#allocation6 + $0x2b4] ss:$20 sps:$4 sm:$0xff]   ;;  %p3369_p13 = por %p3368_p12, %p3367_p11 }
  0x55   :  { %p3370_p0 = pnand %p3369_p13, %p3363_p10 }
  0x58   :  { %1188 = vmatpush1.bf16.xpose.msra.mxu0 %v3089_v19  ;;  %v3176_v19 = vld [vmem:[#allocation3 + $0x28] ss:$20 sps:$4 sm:$0xff]  }
  0x59   :  { %2890 = vmatpush3.bf16.xpose.msra.mxu1 %v3090_v20  ;;  %1189 = vmatprep.subr.bf16.mxu0 %v3091_v21  ;;  %v3177_v20 = vld [vmem:[#allocation6 + $0x2b0] ss:$20 sps:$4 sm:$0xff]   ;;  %v3180_v21 = vld [vmem:[#allocation3 + $0x54] ss:$20 sps:$4 sm:$0xff]  }
  0x5a   :  { %2891 = vmatprep.subr.bf16.mxu1 %v3093_v22  ;;  %v3184_v22 = vld [vmem:[#allocation6 + $0x5c] ss:$20 sps:$4 sm:$0xff]  }
  0x60   :  { %1190 = vmatpush1.bf16.xpose.msra.mxu0 %v3094_v23  ;;  %v3188_v23 = vld [vmem:[#allocation6 + $0x2dc] ss:$20 sps:$4 sm:$0xff]  }
  0x61   :  { %2892 = vmatpush3.bf16.xpose.msra.mxu1 %v3095_v24  ;;  %1191 = vmatprep.subr.bf16.mxu0 %v3096_v25  ;;  %v3182_v24 = vld [vmem:[#allocation6 + $0x58] ss:$20 sps:$4 sm:$0xff]   ;;  %v3185_v25 = vld [vmem:[#allocation3 + $0x50] ss:$20 sps:$4 sm:$0xff]  }
  0x62   :  { %2893 = vmatprep.subr.bf16.mxu1 %v3098_v26  ;;  %v3186_v26 = vld [vmem:[#allocation6 + $0x2d8] ss:$20 sps:$4 sm:$0xff]  }
  0x68   :  { %1192 = vmatpush1.bf16.xpose.msra.mxu0 %v3099_v27  ;;  %v3189_v27 = vld [vmem:[#allocation3 + $0x7c] ss:$20 sps:$4 sm:$0xff]  }
  0x69   :  { %2894 = vmatpush3.bf16.xpose.msra.mxu1 %v3100_v28  ;;  %1193 = vmatprep.subr.bf16.mxu0 %v3101_v29  ;;  %v3193_v28 = vld [vmem:[#allocation6 + $0x84] ss:$20 sps:$4 sm:$0xff]  }
  0x6a   :  { %2895 = vmatprep.subr.bf16.mxu1 %v3103_v30  ;;  %v3197_v29 = vld [vmem:[#allocation6 + $0x304] ss:$20 sps:$4 sm:$0xff]   ;;  %v3191_v30 = vld [vmem:[#allocation6 + $0x80] ss:$20 sps:$4 sm:$0xff]  }
  0x70   :  { %1194 = vmatpush1.bf16.xpose.msra.mxu0 %v3104_v31  ;;  %v3194_v31 = vld [vmem:[#allocation3 + $0x78] ss:$20 sps:$4 sm:$0xff]  }
  0x71   :  { %2896 = vmatpush3.bf16.xpose.msra.mxu1 %v3105_v32  ;;  %1195 = vmatprep.subr.bf16.mxu0 %v3107_v33  ;;  %v3195_v32 = vld [vmem:[#allocation6 + $0x300] ss:$20 sps:$4 sm:$0xff]   ;;  %v3198_v33 = vld [vmem:[#allocation3 + $0xa4] ss:$20 sps:$4 sm:$0xff]  }
  0x72   :  { %1518 = vmatprep.subr.bf16.mxu1 %v3111_v35  ;;  %v3206_v35 = vld [vmem:[#allocation6 + $0x32c] ss:$20 sps:$4 sm:$0xff]  }
  0x78   :  { %2898 = vmatmul.mubr.bf16.vlgmr.msra.gmra.mrb[0].mxu1 %v3462_v18  ;;  %1196 = vmatpush1.bf16.xpose.msra.mxu0 %v3112_v37  ;;  %v3203_v37 = vld [vmem:[#allocation3 + $0xa0] ss:$20 sps:$4 sm:$0xff]  }
  0x79   :  { %1519 = vmatpush1.bf16.xpose.msra.mxu1 %v3109_v36  ;;  %2899 = vmatprep.mubr.bf16.mxu1 %v3468_v38  ;;  %v3200_v36 = vld [vmem:[#allocation6 + $0xa8] ss:$20 sps:$4 sm:$0xff]  }
  0x7a   :  { %1197 = vmatprep.subr.bf16.mxu0 %v3114_v39  ;;  %1520 = vmatprep.subr.bf16.mxu1 %v3118_v40  ;;  %v3204_v39 = vld [vmem:[#allocation6 + $0x328] ss:$20 sps:$4 sm:$0xff]   ;;  %v3207_v40 = vld [vmem:[#allocation3 + $0xcc] ss:$20 sps:$4 sm:$0xff]  }
  0x80   :  { %2900 = vmatmul.mubr.bf16.gmra.mrb[4].mxu1 %v3468_v38  ;;  %1198 = vmatpush1.bf16.xpose.msra.mxu0 %v3119_v42  ;;  %v3215_v42 = vld [vmem:[#allocation6 + $0x354] ss:$20 sps:$4 sm:$0xff]  }
  0x81   :  { %1521 = vmatpush1.bf16.xpose.msra.mxu1 %v3116_v41  ;;  %2901 = vmatprep.mubr.bf16.mxu1 %v3472_v43  ;;  %v3211_v41 = vld [vmem:[#allocation6 + $0xd4] ss:$20 sps:$4 sm:$0xff]  }
  0x82   :  { %1199 = vmatprep.subr.bf16.mxu0 %v3121_v44  ;;  %1522 = vmatprep.subr.bf16.mxu1 %v3125_v45  ;;  %v3209_v44 = vld [vmem:[#allocation6 + $0xd0] ss:$20 sps:$4 sm:$0xff]   ;;  %v3212_v45 = vld [vmem:[#allocation3 + $0xc8] ss:$20 sps:$4 sm:$0xff]  }
  0x88   :  { %2902 = vmatmul.mubr.bf16.gmra.mrb[8].mxu1 %v3472_v43  ;;  %1200 = vmatpush1.bf16.xpose.msra.mxu0 %v3126_v47  ;;  %v3216_v47 = vld [vmem:[#allocation3 + $0xf4] ss:$20 sps:$4 sm:$0xff]  }
  0x89   :  { %1523 = vmatpush1.bf16.xpose.msra.mxu1 %v3123_v46  ;;  %2903 = vmatprep.mubr.bf16.mxu1 %v3476_v48  ;;  %v3213_v46 = vld [vmem:[#allocation6 + $0x350] ss:$20 sps:$4 sm:$0xff]  }
  0x8a   :  { %1201 = vmatprep.subr.bf16.mxu0 %v3128_v49  ;;  %1524 = vmatprep.subr.bf16.mxu1 %v3132_v50  ;;  %v3220_v49 = vld [vmem:[#allocation6 + $0xfc] ss:$20 sps:$4 sm:$0xff]  }
  0x8b   :  { %v3224_v50 = vld [vmem:[#allocation6 + $0x37c] ss:$20 sps:$4 sm:$0xff]  }
  0x90   :  { %2904 = vmatmul.mubr.bf16.gmra.mrb[12].mxu1 %v3476_v48  ;;  %1202 = vmatpush1.bf16.xpose.msra.mxu0 %v3133_v52  ;;  %v3221_v52 = vld [vmem:[#allocation3 + $0xf0] ss:$20 sps:$4 sm:$0xff]  }
  0x91   :  { %1525 = vmatpush1.bf16.xpose.msra.mxu1 %v3130_v51  ;;  %2905 = vmatprep.mubr.bf16.mxu1 %v3480_v53  ;;  %v3218_v51 = vld [vmem:[#allocation6 + $0xf8] ss:$20 sps:$4 sm:$0xff]  }
  0x92   :  { %1203 = vmatprep.subr.bf16.mxu0 %v3135_v54  ;;  %1526 = vmatprep.subr.bf16.mxu1 %v3139_v55  ;;  %v3222_v54 = vld [vmem:[#allocation6 + $0x378] ss:$20 sps:$4 sm:$0xff]   ;;  %v3225_v55 = vld [vmem:[#allocation3 + $0x11c] ss:$20 sps:$4 sm:$0xff]  }
  0x98   :  { %2906 = vmatmul.mubr.bf16.gmra.mrb[16].mxu1 %v3480_v53  ;;  %1204 = vmatpush1.bf16.xpose.msra.mxu0 %v3140_v56  ;;  %v3229_v56 = vld [vmem:[#allocation6 + $0x124] ss:$20 sps:$4 sm:$0xff]  }
  0x99   :  { %1527 = vmatpush1.bf16.xpose.msra.mxu1 %v3137_v57  ;;  %2907 = vmatprep.mubr.bf16.mxu1 %v3484_v58  ;;  %v3233_v57 = vld [vmem:[#allocation6 + $0x3a4] ss:$20 sps:$4 sm:$0xff]  }
  0x9a   :  { %1205 = vmatprep.subr.bf16.mxu0 %v3142_v59  ;;  %1528 = vmatprep.subr.bf16.mxu1 %v3146_v60  ;;  %v3227_v59 = vld [vmem:[#allocation6 + $0x120] ss:$20 sps:$4 sm:$0xff]   ;;  %v3230_v60 = vld [vmem:[#allocation3 + $0x118] ss:$20 sps:$4 sm:$0xff]  }
  0xa0   :  { %2908 = vmatmul.mubr.bf16.gmra.mrb[20].mxu1 %v3484_v58  ;;  %1206 = vmatpush1.bf16.xpose.msra.mxu0 %v3147_v62  ;;  %v3236_v62 = vld [vmem:[#allocation3 + $0xc] ss:$20 sps:$4 sm:$0xff]  }
  0xa1   :  { %1529 = vmatpush1.bf16.xpose.msra.mxu1 %v3144_v61  ;;  %2909 = vmatprep.mubr.bf16.mxu1 %v3488_v63  ;;  %v3231_v61 = vld [vmem:[#allocation6 + $0x3a0] ss:$20 sps:$4 sm:$0xff]  }
  0xa2   :  { %1207 = vmatprep.subr.bf16.mxu0 %v3149_v0  ;;  %1530 = vmatprep.subr.bf16.mxu1 %v3153_v1  ;;  %v3239_v0 = vld [vmem:[#allocation6 + $0x14c] ss:$20 sps:$4 sm:$0xff]   ;;  %v3240_v1 = vld [vmem:[#allocation6 + $0x290] ss:$20 sps:$4 sm:$0xff]  }
  0xa8   :  { %2910 = vmatmul.mubr.bf16.gmra.mrb[24].mxu1 %v3488_v63  ;;  %1208 = vmatpush1.bf16.xpose.msra.mxu0 %v3154_v3  ;;  %v3237_v3 = vld [vmem:[#allocation6 + $0x148] ss:$20 sps:$4 sm:$0xff]  }
  0xa9   :  { %1531 = vmatpush1.bf16.xpose.msra.mxu1 %v3151_v2  ;;  %2911 = vmatprep.mubr.bf16.mxu1 %v3492_v4  ;;  %v3498_v2 = vld [vmem:[#allocation3 + $0x8] ss:$20 sps:$4 sm:$0xff]  }
  0xaa   :  { %1209 = vmatprep.subr.bf16.mxu0 %v3156_v5  ;;  %1532 = vmatprep.subr.bf16.mxu1 %v3160_v6  ;;  %v3500_v5 = vld [vmem:[#allocation3 + $0x34] ss:$20 sps:$4 sm:$0xff]  }
  0xab   :  { %v3245_v6 = vld [vmem:[#allocation6 + $0x174] ss:$20 sps:$4 sm:$0xff]  }
  0xb0   :  { %2912 = vmatmul.mubr.bf16.gmra.mrb[28].mxu1 %v3492_v4  ;;  %1210 = vmatpush1.bf16.xpose.msra.mxu0 %v3161_v7  ;;  %v3247_v7 = vld [vmem:[#allocation6 + $0x2b8] ss:$20 sps:$4 sm:$0xff]  }
  0xb1   :  { %1533 = vmatpush1.bf16.xpose.msra.mxu1 %v3158_v8  ;;  %1550 = vmatprep.mubr.bf16.mxu1 %v3465_v34  ;;  %v3202_v34 = vld [vmem:[#allocation6 + $0xac] ss:$20 sps:$4 sm:$0xff]   ;;  %v3243_v8 = vld [vmem:[#allocation6 + $0x170] ss:$20 sps:$4 sm:$0xff]  }
  0xb2   :  { %1292 = vmatprep.subr.bf16.mxu0 %v3167_v9  ;;  %1615 = vmatprep.subr.bf16.mxu1 %v3170_v10  ;;  %v3504_v9 = vld [vmem:[#allocation3 + $0x30] ss:$20 sps:$4 sm:$0xff]  }
  0xb3   :  { %v3506_v10 = vld [vmem:[#allocation3 + $0x5c] ss:$20 sps:$4 sm:$0xff]  }
  0xb7   :  { %1212 = vmatmul.mubr.bf16.vlgmr.msra.gmra.mrb[0].mxu0 %v3162_v11 }
  0xb8   :  { %1551 = vmatmul.mubr.bf16.vlgmr.msra.gmra.mrb[32].mxu1 %v3162_v11  ;;  %1293 = vmatpush1.bf16.xpose.msra.mxu0 %v3165_v12  ;;  %v3252_v11 = vld [vmem:[#allocation6 + $0x19c] ss:$20 sps:$4 sm:$0xff]   ;;  %v3254_v12 = vld [vmem:[#allocation6 + $0x2e0] ss:$20 sps:$4 sm:$0xff]  }
  0xb9   :  { %1616 = vmatpush1.bf16.xpose.msra.mxu1 %v3168_v13  ;;  %1558 = vmatprep.mubr.bf16.mxu1 %v3171_v14  ;;  %v3250_v13 = vld [vmem:[#allocation6 + $0x198] ss:$20 sps:$4 sm:$0xff]  }
  0xba   :  { %1294 = vmatprep.subr.bf16.mxu0 %v3175_v15  ;;  %1617 = vmatprep.subr.bf16.mxu1 %v3179_v16  ;;  %v3512_v15 = vld [vmem:[#allocation3 + $0x84] ss:$20 sps:$4 sm:$0xff]  }
  0xbb   :  { %1221 = vmatprep.mubr.bf16.mxu0 %v3171_v14  ;;  %v3510_v14 = vld [vmem:[#allocation3 + $0x58] ss:$20 sps:$4 sm:$0xff]  }
  0xbc   :  { %v3259_v16 = vld [vmem:[#allocation6 + $0x1c4] ss:$20 sps:$4 sm:$0xff]  }
  0xbf   :  { %1222 = vmatmul.mubr.bf16.gmra.mrb[4].mxu0 %v3176_v19 }
  0xc0   :  { %1559 = vmatmul.mubr.bf16.gmra.mrb[36].mxu1 %v3176_v19  ;;  %1295 = vmatpush1.bf16.xpose.msra.mxu0 %v3173_v17  ;;  %v3261_v17 = vld [vmem:[#allocation6 + $0x308] ss:$20 sps:$4 sm:$0xff]   ;;  %v3257_v19 = vld [vmem:[#allocation6 + $0x1c0] ss:$20 sps:$4 sm:$0xff]  }
  0xc1   :  { %1618 = vmatpush1.bf16.xpose.msra.mxu1 %v3177_v20  ;;  %1566 = vmatprep.mubr.bf16.mxu1 %v3180_v21  ;;  %v3516_v20 = vld [vmem:[#allocation3 + $0x80] ss:$20 sps:$4 sm:$0xff]  }
  0xc2   :  { %1296 = vmatprep.subr.bf16.mxu0 %v3184_v22  ;;  %1619 = vmatprep.subr.bf16.mxu1 %v3188_v23  ;;  %v3266_v22 = vld [vmem:[#allocation6 + $0x1ec] ss:$20 sps:$4 sm:$0xff]   ;;  %v3268_v23 = vld [vmem:[#allocation6 + $0x330] ss:$20 sps:$4 sm:$0xff]  }
  0xc3   :  { %1231 = vmatprep.mubr.bf16.mxu0 %v3180_v21  ;;  %v3518_v21 = vld [vmem:[#allocation3 + $0xac] ss:$20 sps:$4 sm:$0xff]  }
  0xc7   :  { %1232 = vmatmul.mubr.bf16.gmra.mrb[8].mxu0 %v3185_v25 }
  0xc8   :  { %1567 = vmatmul.mubr.bf16.gmra.mrb[40].mxu1 %v3185_v25  ;;  %1297 = vmatpush1.bf16.xpose.msra.mxu0 %v3182_v24  ;;  %v3264_v24 = vld [vmem:[#allocation6 + $0x1e8] ss:$20 sps:$4 sm:$0xff]  }
  0xc9   :  { %1620 = vmatpush1.bf16.xpose.msra.mxu1 %v3186_v26  ;;  %1574 = vmatprep.mubr.bf16.mxu1 %v3189_v27  ;;  %v3267_v25 = vld [vmem:[#allocation3 + $0xa8] ss:$20 sps:$4 sm:$0xff]  }
  0xca   :  { %1298 = vmatprep.subr.bf16.mxu0 %v3193_v28  ;;  %1621 = vmatprep.subr.bf16.mxu1 %v3197_v29  ;;  %v3269_v26 = vld [vmem:[#allocation3 + $0xd4] ss:$20 sps:$4 sm:$0xff]   ;;  %v3275_v28 = vld [vmem:[#allocation6 + $0x358] ss:$20 sps:$4 sm:$0xff]   ;;  %v3271_v29 = vld [vmem:[#allocation6 + $0x210] ss:$20 sps:$4 sm:$0xff]  }
  0xcb   :  { %1241 = vmatprep.mubr.bf16.mxu0 %v3189_v27  ;;  %v3273_v27 = vld [vmem:[#allocation6 + $0x214] ss:$20 sps:$4 sm:$0xff]  }
  0xcf   :  { %1242 = vmatmul.mubr.bf16.gmra.mrb[12].mxu0 %v3194_v31 }
  0xd0   :  { %1575 = vmatmul.mubr.bf16.gmra.mrb[44].mxu1 %v3194_v31  ;;  %1299 = vmatpush1.bf16.xpose.msra.mxu0 %v3191_v30  ;;  %v3274_v30 = vld [vmem:[#allocation3 + $0xd0] ss:$20 sps:$4 sm:$0xff]  }
  0xd1   :  { %1622 = vmatpush1.bf16.xpose.msra.mxu1 %v3195_v32  ;;  %1582 = vmatprep.mubr.bf16.mxu1 %v3198_v33  ;;  %v3276_v31 = vld [vmem:[#allocation3 + $0xfc] ss:$20 sps:$4 sm:$0xff]  }
  0xd2   :  { %1300 = vmatprep.subr.bf16.mxu0 %v3202_v34  ;;  %1623 = vmatprep.subr.bf16.mxu1 %v3206_v35  ;;  %v3280_v32 = vld [vmem:[#allocation6 + $0x23c] ss:$20 sps:$4 sm:$0xff]   ;;  %v3278_v34 = vld [vmem:[#allocation6 + $0x238] ss:$20 sps:$4 sm:$0xff]  }
  0xd3   :  { %1251 = vmatprep.mubr.bf16.mxu0 %v3198_v33  ;;  %v3282_v33 = vld [vmem:[#allocation6 + $0x380] ss:$20 sps:$4 sm:$0xff]   ;;  %v3281_v35 = vld [vmem:[#allocation3 + $0xf8] ss:$20 sps:$4 sm:$0xff]  }
  0xd7   :  { %1252 = vmatmul.mubr.bf16.gmra.mrb[16].mxu0 %v3203_v37 }
  0xd8   :  { %1583 = vmatmul.mubr.bf16.gmra.mrb[48].mxu1 %v3203_v37  ;;  %1301 = vmatpush1.bf16.xpose.msra.mxu0 %v3200_v36  ;;  %v3283_v36 = vld [vmem:[#allocation3 + $0x124] ss:$20 sps:$4 sm:$0xff]  }
  0xd9   :  { %1624 = vmatpush1.bf16.xpose.msra.mxu1 %v3204_v39  ;;  %1590 = vmatprep.mubr.bf16.mxu1 %v3207_v40  ;;  %v3287_v37 = vld [vmem:[#allocation6 + $0x264] ss:$20 sps:$4 sm:$0xff]   ;;  %v3289_v39 = vld [vmem:[#allocation6 + $0x3a8] ss:$20 sps:$4 sm:$0xff]  }
  0xda   :  { %1302 = vmatprep.subr.bf16.mxu0 %v3211_v41  ;;  %1625 = vmatprep.subr.bf16.mxu1 %v3215_v42  ;;  %v3288_v41 = vld [vmem:[#allocation3 + $0x120] ss:$20 sps:$4 sm:$0xff]  }
  0xdb   :  { %1261 = vmatprep.mubr.bf16.mxu0 %v3207_v40  ;;  %v3285_v40 = vld [vmem:[#allocation6 + $0x260] ss:$20 sps:$4 sm:$0xff]  }
  0xdf   :  { %1262 = vmatmul.mubr.bf16.gmra.mrb[20].mxu0 %v3212_v45 }
  0xe0   :  { %1591 = vmatmul.mubr.bf16.gmra.mrb[52].mxu1 %v3212_v45  ;;  %1303 = vmatpush1.bf16.xpose.msra.mxu0 %v3209_v44 }
  0xe1   :  { %1626 = vmatpush1.bf16.xpose.msra.mxu1 %v3213_v46  ;;  %1598 = vmatprep.mubr.bf16.mxu1 %v3216_v47 }
  0xe2   :  { %1304 = vmatprep.subr.bf16.mxu0 %v3220_v49  ;;  %1627 = vmatprep.subr.bf16.mxu1 %v3224_v50 }
  0xe3   :  { %1271 = vmatprep.mubr.bf16.mxu0 %v3216_v47 }
  0xe7   :  { %1272 = vmatmul.mubr.bf16.gmra.mrb[24].mxu0 %v3221_v52 }
  0xe8   :  { %1599 = vmatmul.mubr.bf16.gmra.mrb[56].mxu1 %v3221_v52  ;;  %1305 = vmatpush1.bf16.xpose.msra.mxu0 %v3218_v51 }
  0xe9   :  { %1628 = vmatpush1.bf16.xpose.msra.mxu1 %v3222_v54  ;;  %1606 = vmatprep.mubr.bf16.mxu1 %v3225_v55 }
  0xea   :  { %1306 = vmatprep.subr.bf16.mxu0 %v3229_v56  ;;  %1629 = vmatprep.subr.bf16.mxu1 %v3233_v57 }
  0xeb   :  { %1281 = vmatprep.mubr.bf16.mxu0 %v3225_v55 }
  0xef   :  { %1282 = vmatmul.mubr.bf16.gmra.mrb[28].mxu0 %v3230_v60 }
  0xf0   :  { %1607 = vmatmul.mubr.bf16.gmra.mrb[60].mxu1 %v3230_v60  ;;  %1307 = vmatpush1.bf16.xpose.msra.mxu0 %v3227_v59 }
  0xf1   :  { %1630 = vmatpush1.bf16.xpose.msra.mxu1 %v3231_v61  ;;  %1647 = vmatprep.mubr.bf16.mxu1 %v3236_v62 }
  0xf2   :  { %1308 = vmatprep.subr.bf16.mxu0 %v3239_v0  ;;  %2929 = vmatprep.subr.bf16.mxu1 %v3240_v1 }
  0xf3   :  { %1324 = vmatprep.mubr.bf16.mxu0 %v3236_v62 }
  0xf8   :  { %1648 = vmatmul.mubr.bf16.vlgmr.msra.gmra.mrb[32].mxu1 %v3498_v2  ;;  %1309 = vmatpush1.bf16.xpose.msra.mxu0 %v3237_v3 }
  0xf9   :  { %2930 = vmatpush3.bf16.xpose.msra.mxu1 %v3240_v1  ;;  %1655 = vmatprep.mubr.bf16.mxu1 %v3500_v5 }
  0xfa   :  { %1310 = vmatprep.subr.bf16.mxu0 %v3245_v6  ;;  %2931 = vmatprep.subr.bf16.mxu1 %v3247_v7 }
 0x100   :  { %1656 = vmatmul.mubr.bf16.gmra.mrb[36].mxu1 %v3504_v9  ;;  %1311 = vmatpush1.bf16.xpose.msra.mxu0 %v3243_v8 }
 0x101   :  { %2932 = vmatpush3.bf16.xpose.msra.mxu1 %v3247_v7  ;;  %1663 = vmatprep.mubr.bf16.mxu1 %v3506_v10 }
 0x102   :  { %1312 = vmatprep.subr.bf16.mxu0 %v3252_v11  ;;  %2933 = vmatprep.subr.bf16.mxu1 %v3254_v12 }
 0x108   :  { %1664 = vmatmul.mubr.bf16.gmra.mrb[40].mxu1 %v3510_v14  ;;  %1313 = vmatpush1.bf16.xpose.msra.mxu0 %v3250_v13 }
 0x109   :  { %2934 = vmatpush3.bf16.xpose.msra.mxu1 %v3254_v12  ;;  %1671 = vmatprep.mubr.bf16.mxu1 %v3512_v15 }
 0x10a   :  { %1314 = vmatprep.subr.bf16.mxu0 %v3259_v16  ;;  %2935 = vmatprep.subr.bf16.mxu1 %v3261_v17 }
 0x110   :  { %1672 = vmatmul.mubr.bf16.gmra.mrb[44].mxu1 %v3516_v20  ;;  %1315 = vmatpush1.bf16.xpose.msra.mxu0 %v3257_v19 }
 0x111   :  { %2936 = vmatpush3.bf16.xpose.msra.mxu1 %v3261_v17  ;;  %1679 = vmatprep.mubr.bf16.mxu1 %v3518_v21 }
 0x112   :  { %1316 = vmatprep.subr.bf16.mxu0 %v3266_v22  ;;  %2937 = vmatprep.subr.bf16.mxu1 %v3268_v23 }
 0x118   :  { %1680 = vmatmul.mubr.bf16.gmra.mrb[48].mxu1 %v3267_v25  ;;  %1317 = vmatpush1.bf16.xpose.msra.mxu0 %v3264_v24 }
 0x119   :  { %2938 = vmatpush3.bf16.xpose.msra.mxu1 %v3268_v23  ;;  %1687 = vmatprep.mubr.bf16.mxu1 %v3269_v26 }
 0x11a   :  { %1318 = vmatprep.subr.bf16.mxu0 %v3273_v27  ;;  %2939 = vmatprep.subr.bf16.mxu1 %v3275_v28 }
 0x120   :  { %1688 = vmatmul.mubr.bf16.gmra.mrb[52].mxu1 %v3274_v30  ;;  %1319 = vmatpush1.bf16.xpose.msra.mxu0 %v3271_v29 }
 0x121   :  { %2940 = vmatpush3.bf16.xpose.msra.mxu1 %v3275_v28  ;;  %1695 = vmatprep.mubr.bf16.mxu1 %v3276_v31 }
 0x122   :  { %1320 = vmatprep.subr.bf16.mxu0 %v3280_v32  ;;  %2941 = vmatprep.subr.bf16.mxu1 %v3282_v33 }
 0x128   :  { %1696 = vmatmul.mubr.bf16.gmra.mrb[56].mxu1 %v3281_v35  ;;  %1321 = vmatpush1.bf16.xpose.msra.mxu0 %v3278_v34 }
 0x129   :  { %2942 = vmatpush3.bf16.xpose.msra.mxu1 %v3282_v33  ;;  %1703 = vmatprep.mubr.bf16.mxu1 %v3283_v36 }
 0x12a   :  { %1322 = vmatprep.subr.bf16.mxu0 %v3287_v37  ;;  %2943 = vmatprep.subr.bf16.mxu1 %v3289_v39 }
 0x130   :  { %1704 = vmatmul.mubr.bf16.gmra.mrb[60].mxu1 %v3288_v41  ;;  %1323 = vmatpush1.bf16.xpose.msra.mxu0 %v3285_v40 }
 0x131   :  { %2944 = vmatpush3.bf16.xpose.msra.mxu1 %v3289_v39  ;;  %2945 = vmatprep.mubr.bf16.mxu1 %v3462_v18 }
 0x137   :  { %1325 = vmatmul.mubr.bf16.vlgmr.msra.gmra.mrb[0].mxu0 %v3498_v2 }
 0x138   :  { %2946 = vmatmul.mubr.bf16.vlgmr.msra.gmra.mrb[64].mxu1 %v3468_v38  ;;  %1334 = vmatprep.mubr.bf16.mxu0 %v3500_v5 }
 0x139   :  { %2949 = vmatprep.mubr.bf16.mxu1 %v3472_v43 }
 0x13f   :  { %1335 = vmatmul.mubr.bf16.gmra.mrb[4].mxu0 %v3504_v9 }
 0x140   :  { %2950 = vmatmul.mubr.bf16.gmra.mrb[68].mxu1 %v3476_v48  ;;  %1344 = vmatprep.mubr.bf16.mxu0 %v3506_v10 }
 0x141   :  { %2953 = vmatprep.mubr.bf16.mxu1 %v3480_v53 }
 0x147   :  { %1345 = vmatmul.mubr.bf16.gmra.mrb[8].mxu0 %v3510_v14 }
 0x148   :  { %2954 = vmatmul.mubr.bf16.gmra.mrb[72].mxu1 %v3484_v58  ;;  %1354 = vmatprep.mubr.bf16.mxu0 %v3512_v15 }
 0x149   :  { %2957 = vmatprep.mubr.bf16.mxu1 %v3488_v63 }
 0x14b   :  { %v3535_v18 = vpop.f32.mrb[0].mxu1 }
 0x14c   :  { %v3537_v38 = vpop.f32.mrb[1].mxu1 }
 0x14d   :  { %v3539_v43 = vpop.f32.mrb[2].mxu1 }
 0x14e   :  { %v3541_v42 = vpop.f32.mrb[3].mxu1 }
 0x14f   :  { %1355 = vmatmul.mubr.bf16.gmra.mrb[12].mxu0 %v3516_v20 }
 0x150   :  { %2958 = vmatmul.mubr.bf16.gmra.mrb[76].mxu1 %v3492_v4  ;;  %1364 = vmatprep.mubr.bf16.mxu0 %v3518_v21 }
 0x153   :  { %v3546_v48 = vpop.f32.mrb[4].mxu1 }
 0x154   :  { %v3548_v53 = vpop.f32.mrb[5].mxu1 }
 0x155   :  { %v3550_v58 = vpop.f32.mrb[6].mxu1 }
 0x156   :  { %v3552_v63 = vpop.f32.mrb[7].mxu1 }
 0x157   :  { %1365 = vmatmul.mubr.bf16.gmra.mrb[16].mxu0 %v3267_v25 }
 0x158   :  { %1374 = vmatprep.mubr.bf16.mxu0 %v3269_v26 }
 0x15b   :  { %v3554_v44 = vpop.f32.mrb[8].mxu1 }
 0x15c   :  { %v3556_v45 = vpop.f32.mrb[9].mxu1 }
 0x15d   :  { %v3558_v46 = vpop.f32.mrb[10].mxu1 }
 0x15e   :  { %v3560_v47 = vpop.f32.mrb[11].mxu1 }
 0x15f   :  { %1375 = vmatmul.mubr.bf16.gmra.mrb[20].mxu0 %v3274_v30 }
 0x160   :  { %1384 = vmatprep.mubr.bf16.mxu0 %v3276_v31 }
 0x163   :  { %v3562_v4 = vpop.f32.mrb[12].mxu1 }
 0x164   :  { %v3564_v49 = vpop.f32.mrb[13].mxu1 }
 0x165   :  { %v3566_v50 = vpop.f32.mrb[14].mxu1 }
 0x166   :  { %v3568_v51 = vpop.f32.mrb[15].mxu1 }
 0x167   :  { %1385 = vmatmul.mubr.bf16.gmra.mrb[24].mxu0 %v3281_v35 }
 0x168   :  { %1394 = vmatprep.mubr.bf16.mxu0 %v3283_v36  ;;  %v1962_v36 = vlaneseq }
 0x16a   :  { %v3622_v39 = vshrl.u32 %v1962_v36, 7 }
 0x16b   :  { %v3570_v52 = vpop.f32.mrb[16].mxu1 }
 0x16c   :  { %v3572_v54 = vpop.f32.mrb[17].mxu1  ;;  %4526 = vst [vmem:[#allocation15_spill] sm:$0xff] %v3622_v39 }
 0x16d   :  { %v3574_v55 = vpop.f32.mrb[18].mxu1 }
 0x16e   :  { %v3576_v56 = vpop.f32.mrb[19].mxu1 }
 0x16f   :  { %1395 = vmatmul.mubr.bf16.gmra.mrb[28].mxu0 %v3288_v41 }
 0x173   :  { %v3578_v57 = vpop.f32.mrb[20].mxu1 }
 0x174   :  { %v3580_v59 = vpop.f32.mrb[21].mxu1 }
 0x175   :  { %v3582_v60 = vpop.f32.mrb[22].mxu1 }
 0x176   :  { %v3584_v61 = vpop.f32.mrb[23].mxu1 }
 0x17b   :  { %v3586_v62 = vpop.f32.mrb[24].mxu1 }
 0x17c   :  { %v3588_v0 = vpop.f32.mrb[25].mxu1 }
 0x17d   :  { %v3590_v1 = vpop.f32.mrb[26].mxu1 }
 0x17e   :  { %v3592_v2 = vpop.f32.mrb[27].mxu1 }
 0x183   :  { %v3594_v3 = vpop.f32.mrb[28].mxu1 }
 0x184   :  { %v3596_v5 = vpop.f32.mrb[29].mxu1 }
 0x185   :  { %v3598_v6 = vpop.f32.mrb[30].mxu1 }
 0x186   :  { %4524 = vst [vmem:[#allocation13_spill] sm:$0xff] %v3598_v6  ;;  %v3600_v7 = vpop.f32.mrb[31].mxu1 }
 0x187   :  { %4525 = vst [vmem:[#allocation14_spill] sm:$0xff] %v3600_v7 }
 0x1cb   :  { %v1649_v8 = vpop.f32.mrb[32].mxu1 }
 0x1cc   :  { %v1651_v9 = vpop.f32.mrb[33].mxu1 }
 0x1cd   :  { %v1652_v10 = vpop.f32.mrb[34].mxu1 }
 0x1ce   :  { %v1654_v11 = vpop.f32.mrb[35].mxu1 }
 0x1cf   :  { %v3629_v11 = vsub.s32 0, %v3622_v39 }
 0x1d1   :  { %4527 = vst [vmem:[#allocation16_spill] sm:$0xff] %v3629_v11 }
 0x1d3   :  { %v1657_v12 = vpop.f32.mrb[36].mxu1 }
 0x1d4   :  { %v1659_v13 = vpop.f32.mrb[37].mxu1 }
 0x1d5   :  { %v1660_v14 = vpop.f32.mrb[38].mxu1 }
 0x1d6   :  { %v1662_v15 = vpop.f32.mrb[39].mxu1 }
 0x1d7   :  { %v1908_v15 = vld [vmem:[#allocation8] ss:$4 sm:$0x7] }
 0x1db   :  { %v3602_v16 = vpop.f32.mrb[40].mxu1 }
 0x1dc   :  { %v1667_v17 = vpop.f32.mrb[41].mxu1 }
 0x1dd   :  { %v3604_v19 = vpop.f32.mrb[42].mxu1  ;;  %v3632_v17 = vsub.s32 1, %v3622_v39 }
 0x1de   :  { %v1670_v20 = vpop.f32.mrb[43].mxu1 }
 0x1df   :  { %4528 = vst [vmem:[#allocation17_spill] sm:$0xff] %v3632_v17  ;;  %v3635_v20 = vsub.s32 2, %v3622_v39 }
 0x1e1   :  { %4529 = vst [vmem:[#allocation18_spill] sm:$0xff] %v3635_v20 }
 0x1e3   :  { %v3606_v21 = vpop.f32.mrb[44].mxu1 }
 0x1e4   :  { %v1675_v22 = vpop.f32.mrb[45].mxu1 }
 0x1e5   :  { %v3608_v23 = vpop.f32.mrb[46].mxu1  ;;  %v3638_v22 = vrot.slane %v1908_v15, %v3629_v11 }
 0x1e6   :  { %v1678_v24 = vpop.f32.mrb[47].mxu1 }
 0x1eb   :  { %v3610_v25 = vpop.f32.mrb[48].mxu1 }
 0x1ec   :  { %v1683_v26 = vpop.f32.mrb[49].mxu1 }
 0x1ed   :  { %v3612_v27 = vpop.f32.mrb[50].mxu1  ;;  %v3641_v26 = vrot.slane %v1908_v15, %v3632_v17 }
 0x1ee   :  { %v1686_v28 = vpop.f32.mrb[51].mxu1 }
 0x1f3   :  { %v3614_v29 = vpop.f32.mrb[52].mxu1 }
 0x1f4   :  { %v1691_v30 = vpop.f32.mrb[53].mxu1 }
 0x1f5   :  { %v3616_v31 = vpop.f32.mrb[54].mxu1 }
 0x1f6   :  { %v1694_v32 = vpop.f32.mrb[55].mxu1 }
 0x1f7   :  { %v3645_v32 = vrot.slane %v1908_v15, %v3635_v20 }
 0x1fb   :  { %v3618_v33 = vpop.f32.mrb[56].mxu1 }
 0x1fc   :  { %v1699_v34 = vpop.f32.mrb[57].mxu1 }
 0x1fd   :  { %v3620_v35 = vpop.f32.mrb[58].mxu1 }
 0x1fe   :  { %v1702_v37 = vpop.f32.mrb[59].mxu1 }
 0x203   :  { %v3624_v40 = vpop.f32.mrb[60].mxu1 }
 0x204   :  { %v1707_v41 = vpop.f32.mrb[61].mxu1 }
 0x205   :  { %v3626_v9 = vpop.f32.mrb[62].mxu1 }
 0x206   :  { %v1710_v13 = vpop.f32.mrb[63].mxu1 }
 0x20a   :  { %v1326_v24 = vpop.f32.mrb[0].mxu0 }
 0x20b   :  { %v2961_v28 = vadd.f32 %v3535_v18, %v1326_v24  ;;  %v2947_v30 = vpop.f32.mrb[64].mxu1  ;;  %v1328_v34 = vpop.f32.mrb[1].mxu0 }
 0x20c   :  { %v1755_v36 = vadd.f32 %v2947_v30, %v1657_v12  ;;  %v2962_v37 = vadd.f32 %v3537_v38, %v1328_v34  ;;  %v1746_v41 = vpop.f32.mrb[65].mxu1  ;;  %v1330_v13 = vpop.f32.mrb[2].mxu0 }
 0x20d   :  { %v3649_v39 = vadd.f32 %v2961_v28, %v3638_v22  ;;  %v1747_v11 = vadd.f32 %v1746_v41, %v1649_v8  ;;  %v2963_v7 = vadd.f32 %v3539_v43, %v1330_v13  ;;  %v2948_v17 = vpop.f32.mrb[66].mxu1  ;;  %v1332_v6 = vpop.f32.mrb[3].mxu0 }
 0x20e   :  { %v3653_v18 = vadd.f32 %v2962_v37, %v3641_v26  ;;  %v1758_v24 = vadd.f32 %v2948_v17, %v1660_v14  ;;  %v2964_v15 = vadd.f32 %v3541_v42, %v1332_v6  ;;  %v1749_v20 = vpop.f32.mrb[67].mxu1  ;;  %v3663_v8 = vadd.f32 %v3645_v32, %v1755_v36 }
 0x20f   :  { %v3657_v12 = vadd.f32 %v3645_v32, %v1747_v11  ;;  %v3660_v38 = vadd.f32 %v2963_v7, %v3638_v22  ;;  %v1750_v28 = vadd.f32 %v1749_v20, %v1652_v10  ;;  %v4472_v30 = vmax.f32 %v3649_v39, 0.0 }
 0x210   :  { %v3666_v43 = vadd.f32 %v2964_v15, %v3641_v26  ;;  %v4475_v6 = vmax.f32 %v3653_v18, 0.0  ;;  %v3675_v11 = vadd.f32 %v3645_v32, %v1758_v24 }
 0x211   :  { %4530 = vst [vmem:[#allocation19_spill] sm:$0xff] %v3660_v38  ;;  %v4471_v14 = vmax.f32 %v3660_v38, 0.0  ;;  %v3671_v42 = vadd.f32 %v3645_v32, %v1750_v28 }
 0x212   :  { %4531 = vst [vmem:[#allocation20_spill] sm:$0xff] %v3666_v43  ;;  %v4474_v7 = vmax.f32 %v3666_v43, 0.0  ;;  %v1336_v10 = vpop.f32.mrb[4].mxu0 }
 0x213   :  { %v2169_v20 = vadd.f32 %v4471_v14, %v4472_v30  ;;  %v4476_v34 = vmax.f32 %v3671_v42, 0.0  ;;  %v2965_v36 = vadd.f32 %v3546_v48, %v1336_v10  ;;  %v2951_v37 = vpop.f32.mrb[68].mxu1  ;;  %v1338_v41 = vpop.f32.mrb[5].mxu0  ;;  %v4532_v14 = vmax.f32 %v3657_v12, 0.0 }
 0x214   :  { %v2190_v24 = vadd.f32 %v4474_v7, %v4475_v6  ;;  %v1771_v15 = vadd.f32 %v2951_v37, %v3606_v21  ;;  %v2966_v28 = vadd.f32 %v3548_v53, %v1338_v41  ;;  %v1762_v17 = vpop.f32.mrb[69].mxu1  ;;  %v1340_v38 = vpop.f32.mrb[6].mxu0  ;;  %v4478_v21 = vmax.f32 %v3675_v11, 0.0 }
 0x215   :  { %v2211_v48 = vadd.f32 %v4476_v34, %v4532_v14  ;;  %v3697_v10 = vadd.f32 %v2965_v36, %v3638_v22  ;;  %v1763_v30 = vadd.f32 %v1762_v17, %v3602_v16  ;;  %v2967_v13 = vadd.f32 %v3550_v58, %v1340_v38  ;;  %v2952_v43 = vpop.f32.mrb[70].mxu1  ;;  %v1342_v7 = vpop.f32.mrb[7].mxu0 }
 0x216   :  { %v3703_v53 = vadd.f32 %v2966_v28, %v3641_v26  ;;  %v1774_v37 = vadd.f32 %v2952_v43, %v3608_v23  ;;  %v2968_v41 = vadd.f32 %v3552_v63, %v1342_v7  ;;  %v1765_v6 = vpop.f32.mrb[71].mxu1  ;;  %v4533_v14 = vmax.f32 %v3663_v8, 0.0 }
 0x217   :  { %v4477_v34 = vmax.f32 %v3697_v10, 0.0  ;;  %v3711_v16 = vadd.f32 %v3645_v32, %v1763_v30  ;;  %v3714_v58 = vadd.f32 %v2967_v13, %v3638_v22  ;;  %v3727_v30 = vadd.f32 %v3645_v32, %v1771_v15 }
 0x218   :  { %v2212_v36 = vadd.f32 %v2211_v48, %v4533_v14  ;;  %v4479_v38 = vmax.f32 %v3703_v53, 0.0  ;;  %v3718_v17 = vadd.f32 %v2968_v41, %v3641_v26  ;;  %v1766_v48 = vadd.f32 %v1765_v6, %v3604_v19 }
 0x219   :  { %v2170_v63 = vadd.f32 %v2169_v20, %v4477_v34  ;;  %v4480_v23 = vmax.f32 %v3711_v16, 0.0  ;;  %v4481_v7 = vmax.f32 %v3714_v58, 0.0 }
 0x21a   :  { %v2213_v43 = vadd.f32 %v2212_v36, %v4478_v21  ;;  %v2191_v13 = vadd.f32 %v2190_v24, %v4479_v38  ;;  %v4482_v28 = vmax.f32 %v3718_v17, 0.0  ;;  %v1346_v41 = vpop.f32.mrb[8].mxu0  ;;  %v3738_v36 = vadd.f32 %v3645_v32, %v1774_v37 }
 0x21b   :  { %v2171_v14 = vadd.f32 %v2170_v63, %v4481_v7  ;;  %v2969_v15 = vadd.f32 %v3554_v44, %v1346_v41  ;;  %v2955_v34 = vpop.f32.mrb[72].mxu1  ;;  %v1348_v21 = vpop.f32.mrb[9].mxu0  ;;  %v3744_v38 = vadd.f32 %v3645_v32, %v1766_v48 }
 0x21c   :  { %v2214_v20 = vadd.f32 %v2213_v43, %v4480_v23  ;;  %v2192_v24 = vadd.f32 %v2191_v13, %v4482_v28  ;;  %v1787_v19 = vadd.f32 %v2955_v34, %v3614_v29  ;;  %v2970_v6 = vadd.f32 %v3556_v45, %v1348_v21  ;;  %v1778_v43 = vpop.f32.mrb[73].mxu1  ;;  %v1350_v23 = vpop.f32.mrb[10].mxu0 }
 0x21d   :  { %v3749_v63 = vadd.f32 %v2969_v15, %v3638_v22  ;;  %v1779_v37 = vadd.f32 %v1778_v43, %v3610_v25  ;;  %v2971_v44 = vadd.f32 %v3558_v46, %v1350_v23  ;;  %v2956_v41 = vpop.f32.mrb[74].mxu1  ;;  %v1352_v7 = vpop.f32.mrb[11].mxu0  ;;  %v4483_v13 = vmax.f32 %v3744_v38, 0.0 }
 0x21e   :  { %v3755_v48 = vadd.f32 %v2970_v6, %v3641_v26  ;;  %v1790_v29 = vadd.f32 %v2956_v41, %v3616_v31  ;;  %v1781_v34 = vpop.f32.mrb[75].mxu1  ;;  %v2972_v46 = vadd.f32 %v3560_v47, %v1352_v7  ;;  %v4485_v25 = vmax.f32 %v3727_v30, 0.0 }
 0x21f   :  { %v4484_v45 = vmax.f32 %v3749_v63, 0.0  ;;  %v3760_v21 = vadd.f32 %v3645_v32, %v1779_v37  ;;  %v3763_v15 = vadd.f32 %v2971_v44, %v3638_v22  ;;  %v2215_v6 = vadd.f32 %v2214_v20, %v4483_v13 }
 0x220   :  { %4534 = vst [vmem:[#allocation21_spill] sm:$0xff] %v3755_v48  ;;  %v4486_v31 = vmax.f32 %v3755_v48, 0.0  ;;  %v3774_v37 = vadd.f32 %v3645_v32, %v1787_v19  ;;  %v3778_v41 = vadd.f32 %v2972_v46, %v3641_v26  ;;  %v1782_v28 = vadd.f32 %v1781_v34, %v3612_v27 }
 0x221   :  { %v2172_v43 = vadd.f32 %v2171_v14, %v4484_v45  ;;  %v4487_v44 = vmax.f32 %v3763_v15, 0.0  ;;  %v2216_v47 = vadd.f32 %v2215_v6, %v4485_v25  ;;  %v3789_v19 = vadd.f32 %v3645_v32, %v1790_v29 }
 0x222   :  { %v2193_v7 = vadd.f32 %v2192_v24, %v4486_v31  ;;  %v1356_v13 = vpop.f32.mrb[12].mxu0  ;;  %v4489_v46 = vmax.f32 %v3778_v41, 0.0  ;;  %v4535_v25 = vmax.f32 %v3738_v36, 0.0  ;;  %v3796_v31 = vadd.f32 %v3645_v32, %v1782_v28 }
 0x223   :  { %v2173_v14 = vadd.f32 %v2172_v43, %v4487_v44  ;;  %v2973_v45 = vadd.f32 %v3562_v4, %v1356_v13  ;;  %v2959_v23 = vpop.f32.mrb[76].mxu1  ;;  %v1358_v6 = vpop.f32.mrb[13].mxu0  ;;  %v4536_v28 = vmax.f32 %v3760_v21, 0.0 }
 0x224   :  { %v2217_v24 = vadd.f32 %v2216_v47, %v4535_v25  ;;  %v1803_v27 = vadd.f32 %v2959_v23, %v3624_v40  ;;  %v2974_v34 = vadd.f32 %v3564_v49, %v1358_v6  ;;  %v1794_v43 = vpop.f32.mrb[77].mxu1  ;;  %v1360_v44 = vpop.f32.mrb[14].mxu0  ;;  %v2194_v29 = vadd.f32 %v2193_v7, %v4489_v46 }
 0x225   :  { %v3803_v20 = vadd.f32 %v2973_v45, %v3638_v22  ;;  %v1795_v4 = vadd.f32 %v1794_v43, %v3618_v33  ;;  %v2975_v13 = vadd.f32 %v3566_v50, %v1360_v44  ;;  %v2960_v25 = vpop.f32.mrb[78].mxu1  ;;  %v1362_v47 = vpop.f32.mrb[15].mxu0  ;;  %v4491_v40 = vmax.f32 %v3796_v31, 0.0 }
 0x226   :  { %v2218_v48 = vadd.f32 %v2217_v24, %v4536_v28  ;;  %v3811_v49 = vadd.f32 %v2974_v34, %v3641_v26  ;;  %v1797_v23 = vpop.f32.mrb[79].mxu1  ;;  %v1806_v50 = vadd.f32 %v2960_v25, %v3626_v9  ;;  %v4506_v44 = vmax.f32 %v3774_v37, 0.0 }
 0x227   :  { %v4490_v7 = vmax.f32 %v3803_v20, 0.0  ;;  %v3815_v45 = vadd.f32 %v3645_v32, %v1795_v4  ;;  %v3818_v33 = vadd.f32 %v2975_v13, %v3638_v22  ;;  %v2976_v34 = vadd.f32 %v3568_v51, %v1362_v47 }
 0x228   :  { %v2219_v6 = vadd.f32 %v2218_v48, %v4491_v40  ;;  %v4492_v24 = vmax.f32 %v3811_v49, 0.0  ;;  %v4505_v43 = vmax.f32 %v3789_v19, 0.0  ;;  %v1798_v51 = vadd.f32 %v1797_v23, %v3620_v35 }
 0x229   :  { %v2174_v4 = vadd.f32 %v2173_v14, %v4490_v7  ;;  %v4497_v28 = vmax.f32 %v3815_v45, 0.0  ;;  %v4494_v13 = vmax.f32 %v3818_v33, 0.0  ;;  %v3836_v48 = vadd.f32 %v2976_v34, %v3641_v26 }
 0x22a   :  { %v2220_v9 = vadd.f32 %v2219_v6, %v4506_v44  ;;  %v2195_v25 = vadd.f32 %v2194_v29, %v4492_v24  ;;  %v1366_v47 = vpop.f32.mrb[16].mxu0  ;;  %v3840_v46 = vadd.f32 %v3645_v32, %v1803_v27  ;;  %v3849_v34 = vadd.f32 %v3645_v32, %v1798_v51 }
 0x22b   :  { %v2175_v14 = vadd.f32 %v2174_v4, %v4494_v13  ;;  %v2977_v7 = vadd.f32 %v3570_v52, %v1366_v47  ;;  %v1368_v40 = vpop.f32.mrb[17].mxu0  ;;  %v4493_v29 = vmax.f32 %v3836_v48, 0.0  ;;  %v3853_v27 = vadd.f32 %v3645_v32, %v1806_v50 }
 0x22c   :  { %v2221_v6 = vadd.f32 %v2220_v9, %v4505_v43  ;;  %v2978_v35 = vadd.f32 %v3572_v54, %v1368_v40  ;;  %v1370_v23 = vpop.f32.mrb[18].mxu0  ;;  %v4496_v51 = vmax.f32 %v3849_v34, 0.0 }
 0x22d   :  { %v3856_v24 = vadd.f32 %v2977_v7, %v3638_v22  ;;  %v2979_v52 = vadd.f32 %v3574_v55, %v1370_v23  ;;  %v1372_v4 = vpop.f32.mrb[19].mxu0  ;;  %v2196_v47 = vadd.f32 %v2195_v25, %v4493_v29  ;;  %v4500_v55 = vmax.f32 %v3840_v46, 0.0 }
 0x22e   :  { %v2222_v9 = vadd.f32 %v2221_v6, %v4497_v28  ;;  %v3865_v54 = vadd.f32 %v2978_v35, %v3641_v26  ;;  %v2980_v7 = vadd.f32 %v3576_v56, %v1372_v4 }
 0x22f   :  { %v4495_v32 = vmax.f32 %v3856_v24, 0.0  ;;  %v3869_v40 = vadd.f32 %v2979_v52, %v3638_v22  ;;  %v4503_v52 = vmax.f32 %v3853_v27, 0.0 }
 0x230   :  { %v2223_v50 = vadd.f32 %v2222_v9, %v4496_v51  ;;  %v4498_v6 = vmax.f32 %v3865_v54, 0.0  ;;  %v3880_v23 = vadd.f32 %v2980_v7, %v3641_v26 }
 0x231   :  { %v2176_v25 = vadd.f32 %v2175_v14, %v4495_v32  ;;  %v4499_v35 = vmax.f32 %v3869_v40, 0.0 }
 0x232   :  { %v2224_v56 = vadd.f32 %v2223_v50, %v4500_v55  ;;  %v2197_v4 = vadd.f32 %v2196_v47, %v4498_v6  ;;  %v1376_v29 = vpop.f32.mrb[20].mxu0  ;;  %v4501_v13 = vmax.f32 %v3880_v23, 0.0 }
 0x233   :  { %v2177_v9 = vadd.f32 %v2176_v25, %v4499_v35  ;;  %v2981_v14 = vadd.f32 %v3578_v57, %v1376_v29  ;;  %v1378_v32 = vpop.f32.mrb[21].mxu0 }
 0x234   :  { %v2225_v7 = vadd.f32 %v2224_v56, %v4503_v52  ;;  %v2982_v51 = vadd.f32 %v3580_v59, %v1378_v32  ;;  %v1380_v28 = vpop.f32.mrb[22].mxu0  ;;  %v2198_v50 = vadd.f32 %v2197_v4, %v4501_v13 }
 0x235   :  { %v3897_v47 = vadd.f32 %v2981_v14, %v3638_v22  ;;  %v2983_v6 = vadd.f32 %v3582_v60, %v1380_v28  ;;  %v1382_v25 = vpop.f32.mrb[23].mxu0 }
 0x236   :  { %v2226_v35 = vrot.slane %v2225_v7, 4  ;;  %v3901_v55 = vadd.f32 %v2982_v51, %v3641_v26  ;;  %v2984_v57 = vadd.f32 %v3584_v61, %v1382_v25 }
 0x237   :  { %v4502_v29 = vmax.f32 %v3897_v47, 0.0  ;;  %v3906_v59 = vadd.f32 %v2983_v6, %v3638_v22 }
 0x238   :  { %v2227_v32 = vadd.f32 %v2226_v35, %v2225_v7  ;;  %v4504_v56 = vmax.f32 %v3901_v55, 0.0  ;;  %v3910_v4 = vadd.f32 %v2984_v57, %v3641_v26 }
 0x239   :  { %v2178_v60 = vadd.f32 %v2177_v9, %v4502_v29  ;;  %v4511_v28 = vmax.f32 %v3906_v59, 0.0 }
 0x23a   :  { %v2228_v51 = vrot.slane %v2227_v32, 2  ;;  %v2199_v61 = vadd.f32 %v2198_v50, %v4504_v56  ;;  %v4508_v14 = vmax.f32 %v3910_v4, 0.0  ;;  %v1386_v25 = vpop.f32.mrb[24].mxu0 }
 0x23b   :  { %v2179_v6 = vadd.f32 %v2178_v60, %v4511_v28  ;;  %v2985_v35 = vadd.f32 %v3586_v62, %v1386_v25  ;;  %v1388_v7 = vpop.f32.mrb[25].mxu0 }
 0x23c   :  { %v2229_v57 = vadd.f32 %v2228_v51, %v2227_v32  ;;  %v2200_v13 = vadd.f32 %v2199_v61, %v4508_v14  ;;  %v2986_v9 = vadd.f32 %v3588_v0, %v1388_v7  ;;  %v1390_v29 = vpop.f32.mrb[26].mxu0 }
 0x23d   :  { %v3925_v52 = vadd.f32 %v2985_v35, %v3638_v22  ;;  %v2987_v50 = vadd.f32 %v3590_v1, %v1390_v29  ;;  %v1392_v56 = vpop.f32.mrb[27].mxu0 }
 0x23e   :  { %v2230_v43 = vrot.slane %v2229_v57, 1  ;;  %v3929_v44 = vadd.f32 %v2986_v9, %v3641_v26  ;;  %v2988_v62 = vadd.f32 %v3592_v2, %v1392_v56 }
 0x23f   :  { %v4510_v32 = vmax.f32 %v3925_v52, 0.0  ;;  %v3934_v60 = vadd.f32 %v2987_v50, %v3638_v22 }
 0x240   :  { %v2231_v51 = vadd.f32 %v2230_v43, %v2229_v57  ;;  %v4507_v0 = vmax.f32 %v3929_v44, 0.0  ;;  %v3945_v56 = vadd.f32 %v2988_v62, %v3641_v26  ;;  %v4537_v57 = vmax.f32 %v3657_v12, 0.0 }
 0x241   :  { %v2180_v61 = vadd.f32 %v2179_v6, %v4510_v32  ;;  %v4509_v1 = vmax.f32 %v3934_v60, 0.0  ;;  %v4538_v6 = vmax.f32 %v3671_v42, 0.0  ;;  %v4543_v12 = vmax.f32 %v3744_v38, 0.0 }
 0x242   :  { %v2234_v29 = vmul.f32 0.0078125, %v2231_v51  ;;  %v2201_v25 = vadd.f32 %v2200_v13, %v4507_v0  ;;  %v1396_v35 = vpop.f32.mrb[28].mxu0  ;;  %v4540_v13 = vmax.f32 %v3663_v8, 0.0  ;;  %v4544_v42 = vmax.f32 %v3727_v30, 0.0 }
 0x243   :  { %v2181_v2 = vadd.f32 %v2180_v61, %v4509_v1  ;;  %v2989_v43 = vadd.f32 %v3594_v3, %v1396_v35  ;;  %v1398_v7 = vpop.f32.mrb[29].mxu0  ;;  %v4541_v61 = vmax.f32 %v3675_v11, 0.0  ;;  %v4542_v3 = vmax.f32 %v3711_v16, 0.0 }
 0x244   :  { %v3950_v9 = vsub.f32 %v4537_v57, %v2234_v29  ;;  %v3954_v50 = vsub.f32 %v4538_v6, %v2234_v29  ;;  %v3958_v51 = vsub.f32 %v4540_v13, %v2234_v29  ;;  %v1400_v62 = vpop.f32.mrb[30].mxu0  ;;  %v3970_v57 = vsub.f32 %v4543_v12, %v2234_v29 }
 0x245   :  { %v3962_v0 = vsub.f32 %v4541_v61, %v2234_v29  ;;  %v3966_v35 = vsub.f32 %v4542_v3, %v2234_v29  ;;  %v3974_v6 = vsub.f32 %v4544_v42, %v2234_v29  ;;  %v4545_v8 = vmax.f32 %v3738_v36, 0.0  ;;  %v1402_v11 = vpop.f32.mrb[31].mxu0 }
 0x246   :  { %4539 = vst [vmem:[#allocation22_spill] sm:$0xff] %v3954_v50  ;;  %v4546_v61 = vmax.f32 %v3760_v21, 0.0  ;;  %v4547_v16 = vmax.f32 %v3796_v31, 0.0  ;;  %v4548_v38 = vmax.f32 %v3774_v37, 0.0  ;;  %v4549_v30 = vmax.f32 %v3789_v19, 0.0 }
 0x247   :  { %v3978_v13 = vsub.f32 %v4545_v8, %v2234_v29  ;;  %v4550_v36 = vmax.f32 %v3815_v45, 0.0  ;;  %v4551_v21 = vmax.f32 %v3849_v34, 0.0  ;;  %v4553_v31 = vmax.f32 %v3840_v46, 0.0 }
 0x248   :  { %v3982_v14 = vsub.f32 %v4546_v61, %v2234_v29  ;;  %v3986_v3 = vsub.f32 %v4547_v16, %v2234_v29  ;;  %v3990_v12 = vsub.f32 %v4548_v38, %v2234_v29  ;;  %v3994_v42 = vsub.f32 %v4549_v30, %v2234_v29 }
 0x249   :  { %v3998_v8 = vsub.f32 %v4550_v36, %v2234_v29  ;;  %v4002_v61 = vsub.f32 %v4551_v21, %v2234_v29  ;;  %v4006_v16 = vsub.f32 %v4553_v31, %v2234_v29  ;;  %v4555_v37 = vmax.f32 %v3853_v27, 0.0 }
 0x24a   :  { %v2381_v19 = vmul.f32 %v3950_v9, %v3950_v9  ;;  %v2384_v45 = vmul.f32 %v3954_v50, %v3954_v50  ;;  %v4515_v30 = vmax.f32 %v3945_v56, 0.0  ;;  %v2387_v34 = vmul.f32 %v3958_v51, %v3958_v51 }
 0x24b   :  { %4552 = vst [vmem:[#allocation23_spill] sm:$0xff] %v4002_v61  ;;  %4554 = vst [vmem:[#allocation24_spill] sm:$0xff] %v4006_v16  ;;  %v4010_v38 = vsub.f32 %v4555_v37, %v2234_v29  ;;  %v4022_v21 = vadd.f32 %v2989_v43, %v3638_v22  ;;  %v2990_v27 = vadd.f32 %v3596_v5, %v1398_v7  ;;  %v4557_v29 = vld [vmem:[#allocation13_spill] sm:$0xff]  ;;  %v4558_v37 = vld [vmem:[#allocation14_spill] sm:$0xff] }
 0x24c   :  { %v2469_v36 = vadd.f32 %v2384_v45, %v2381_v19  ;;  %v2202_v46 = vadd.f32 %v2201_v25, %v4515_v30  ;;  %v2991_v31 = vadd.f32 %v4557_v29, %v1400_v62  ;;  %v2992_v1 = vadd.f32 %v4558_v37, %v1402_v11 }
 0x24d   :  { %4556 = vst [vmem:[#allocation25_spill] sm:$0xff] %v4010_v38  ;;  %v2390_v32 = vmul.f32 %v3962_v0, %v3962_v0  ;;  %v2067_v50 = vmax.f32 %v4022_v21, 0.0  ;;  %v4031_v19 = vadd.f32 %v2990_v27, %v3641_v26  ;;  %v2393_v5 = vmul.f32 %v3966_v35, %v3966_v35 }
 0x24e   :  { %v2470_v28 = vadd.f32 %v2469_v36, %v2387_v34  ;;  %v2022_v25 = vadd.f32 %v2991_v31, %v3638_v22  ;;  %v4035_v43 = vadd.f32 %v2992_v1, %v3641_v26  ;;  %v2396_v36 = vmul.f32 %v3970_v57, %v3970_v57 }
 0x24f   :  { %v2182_v62 = vadd.f32 %v2181_v2, %v2067_v50  ;;  %v4513_v11 = vmax.f32 %v4031_v19, 0.0  ;;  %v2399_v26 = vmul.f32 %v3974_v6, %v3974_v6  ;;  %v2402_v2 = vmul.f32 %v3978_v13, %v3978_v13 }
 0x250   :  { %v2471_v7 = vadd.f32 %v2470_v28, %v2390_v32  ;;  %v2070_v45 = vmax.f32 %v2022_v25, 0.0  ;;  %v4514_v34 = vmax.f32 %v4035_v43, 0.0  ;;  %v2405_v25 = vmul.f32 %v3982_v14, %v3982_v14 }
 0x251   :  { %v2203_v22 = vadd.f32 %v2202_v46, %v4513_v11 }
 0x252   :  { %v2472_v21 = vadd.f32 %v2471_v7, %v2393_v5  ;;  %v2183_v27 = vadd.f32 %v2182_v62, %v2070_v45  ;;  %v2408_v62 = vmul.f32 %v3986_v3, %v3986_v3 }
 0x253   :  { %v2204_v28 = vadd.f32 %v2203_v22, %v4514_v34  ;;  %v2411_v22 = vmul.f32 %v3990_v12, %v3990_v12 }
 0x254   :  { %v2473_v1 = vadd.f32 %v2472_v21, %v2396_v36  ;;  %v2184_v32 = vrot.slane %v2183_v27, 4 }
 0x255   :  { %v2205_v31 = vrot.slane %v2204_v28, 4 }
 0x256   :  { %v2474_v29 = vadd.f32 %v2473_v1, %v2399_v26  ;;  %v2185_v37 = vadd.f32 %v2184_v32, %v2183_v27  ;;  %v2414_v27 = vmul.f32 %v3994_v42, %v3994_v42 }
 0x257   :  { %v2206_v46 = vadd.f32 %v2205_v31, %v2204_v28  ;;  %v2417_v28 = vmul.f32 %v3998_v8, %v3998_v8  ;;  %v2420_v31 = vmul.f32 %v4002_v61, %v4002_v61 }
 0x258   :  { %v2475_v5 = vadd.f32 %v2474_v29, %v2402_v2  ;;  %v2186_v7 = vrot.slane %v2185_v37, 2 }
 0x259   :  { %v2207_v21 = vrot.slane %v2206_v46, 2 }
 0x25a   :  { %v2476_v36 = vadd.f32 %v2475_v5, %v2405_v25  ;;  %v2187_v11 = vadd.f32 %v2186_v7, %v2185_v37  ;;  %v2423_v25 = vmul.f32 %v4006_v16, %v4006_v16  ;;  %v2426_v5 = vmul.f32 %v4010_v38, %v4010_v38 }
 0x25b   :  { %v2208_v30 = vadd.f32 %v2207_v21, %v2206_v46 }
 0x25c   :  { %v2477_v34 = vadd.f32 %v2476_v36, %v2408_v62  ;;  %v2188_v26 = vrot.slane %v2187_v11, 1 }
 0x25d   :  { %v2209_v32 = vrot.slane %v2208_v30, 1 }
 0x25e   :  { %v2478_v1 = vadd.f32 %v2477_v34, %v2411_v22  ;;  %v2189_v2 = vadd.f32 %v2188_v26, %v2187_v11  ;;  %v4559_v34 = vmax.f32 %v3649_v39, 0.0  ;;  %v4560_v11 = vld [vmem:[#allocation19_spill] sm:$0xff]  ;;  %v4562_v22 = vmax.f32 %v3697_v10, 0.0 }
 0x25f   :  { %v2210_v7 = vadd.f32 %v2209_v32, %v2208_v30  ;;  %v4561_v36 = vmax.f32 %v4560_v11, 0.0  ;;  %v4565_v39 = vmax.f32 %v3763_v15, 0.0  ;;  %v4567_v10 = vmax.f32 %v3818_v33, 0.0 }
 0x260   :  { %v2479_v29 = vadd.f32 %v2478_v1, %v2414_v27  ;;  %v2232_v37 = vmul.f32 0.0078125, %v2189_v2  ;;  %v4563_v27 = vmax.f32 %v3714_v58, 0.0  ;;  %v4568_v58 = vmax.f32 %v3856_v24, 0.0 }
 0x261   :  { %v4570_v15 = vmax.f32 %v3897_v47, 0.0  ;;  %v4572_v33 = vmax.f32 %v3925_v52, 0.0  ;;  %v4573_v24 = vmax.f32 %v3934_v60, 0.0  ;;  %v4577_v60 = vmax.f32 %v3653_v18, 0.0 }
 0x262   :  { %v2480_v46 = vadd.f32 %v2479_v29, %v2417_v28  ;;  %v4069_v62 = vsub.f32 %v4559_v34, %v2232_v37  ;;  %v4073_v21 = vsub.f32 %v4561_v36, %v2232_v37  ;;  %v4077_v26 = vsub.f32 %v4562_v22, %v2232_v37 }
 0x263   :  { %v4081_v1 = vsub.f32 %v4563_v27, %v2232_v37  ;;  %v4564_v28 = vmax.f32 %v3749_v63, 0.0  ;;  %v4089_v32 = vsub.f32 %v4565_v39, %v2232_v37  ;;  %v4566_v29 = vmax.f32 %v3803_v20, 0.0 }
 0x264   :  { %v2481_v2 = vadd.f32 %v2480_v46, %v2420_v31  ;;  %v4097_v11 = vsub.f32 %v4567_v10, %v2232_v37  ;;  %v4101_v36 = vsub.f32 %v4568_v58, %v2232_v37  ;;  %v4569_v63 = vmax.f32 %v3869_v40, 0.0 }
 0x265   :  { %v4085_v30 = vsub.f32 %v4564_v28, %v2232_v37  ;;  %v4093_v34 = vsub.f32 %v4566_v29, %v2232_v37  ;;  %v4109_v46 = vsub.f32 %v4570_v15, %v2232_v37  ;;  %v4571_v20 = vmax.f32 %v3906_v59, 0.0 }
 0x266   :  { %v4105_v31 = vsub.f32 %v4569_v63, %v2232_v37  ;;  %v2482_v22 = vadd.f32 %v2481_v2, %v2423_v25  ;;  %v4117_v28 = vsub.f32 %v4572_v33, %v2232_v37  ;;  %v4121_v39 = vsub.f32 %v4573_v24, %v2232_v37 }
 0x267   :  { %v4113_v27 = vsub.f32 %v4571_v20, %v2232_v37  ;;  %v4123_v40 = vsub.f32 %v2067_v50, %v2232_v37  ;;  %v4125_v29 = vsub.f32 %v2070_v45, %v2232_v37  ;;  %v2379_v25 = vmul.f32 %v4069_v62, %v4069_v62  ;;  %v4578_v50 = vld [vmem:[#allocation20_spill] sm:$0xff] }
 0x268   :  { %4574 = vst [vmem:[#allocation13_spill] sm:$0xff] %v4121_v39  ;;  %v4127_v47 = vadd.f32 %v2482_v22, %v2426_v5  ;;  %v2382_v59 = vmul.f32 %v4073_v21, %v4073_v21  ;;  %v2233_v2 = vmul.f32 0.0078125, %v2210_v7  ;;  %v2385_v52 = vmul.f32 %v4077_v26, %v4077_v26  ;;  %v4582_v7 = vld [vmem:[#allocation21_spill] sm:$0xff] }
 0x269   :  { %4575 = vst [vmem:[#allocation14_spill] sm:$0xff] %v4123_v40  ;;  %4576 = vst [vmem:[#allocation19_spill] sm:$0xff] %v4125_v29  ;;  %v4579_v45 = vmax.f32 %v4578_v50, 0.0  ;;  %v4580_v5 = vmax.f32 %v3703_v53, 0.0  ;;  %v4581_v15 = vmax.f32 %v3718_v17, 0.0  ;;  %v4583_v20 = vmax.f32 %v4582_v7, 0.0 }
 0x26a   :  { %v2427_v10 = vadd.f32 %v2382_v59, %v2379_v25  ;;  %v4137_v58 = vsub.f32 %v4577_v60, %v2233_v2  ;;  %v4584_v18 = vmax.f32 %v3778_v41, 0.0  ;;  %v2388_v25 = vmul.f32 %v4081_v1, %v4081_v1 }
 0x26b   :  { %v4141_v37 = vsub.f32 %v4579_v45, %v2233_v2  ;;  %v4145_v63 = vsub.f32 %v4580_v5, %v2233_v2  ;;  %v4149_v22 = vsub.f32 %v4581_v15, %v2233_v2  ;;  %v4153_v33 = vsub.f32 %v4583_v20, %v2233_v2 }
 0x26c   :  { %v4157_v24 = vsub.f32 %v4584_v18, %v2233_v2  ;;  %v2428_v59 = vadd.f32 %v2427_v10, %v2385_v52  ;;  %v4585_v53 = vmax.f32 %v3811_v49, 0.0  ;;  %v4586_v17 = vmax.f32 %v3836_v48, 0.0 }
 0x26d   :  { %v4587_v45 = vmax.f32 %v3865_v54, 0.0  ;;  %v4588_v41 = vmax.f32 %v3880_v23, 0.0  ;;  %v4589_v7 = vmax.f32 %v3901_v55, 0.0  ;;  %v4590_v49 = vmax.f32 %v3910_v4, 0.0 }
 0x26e   :  { %v4163_v60 = vsub.f32 %v4585_v53, %v2233_v2  ;;  %v4167_v50 = vsub.f32 %v4586_v17, %v2233_v2  ;;  %v2391_v48 = vmul.f32 %v4085_v30, %v4085_v30  ;;  %v2429_v10 = vadd.f32 %v2428_v59, %v2388_v25 }
 0x26f   :  { %v4171_v5 = vsub.f32 %v4587_v45, %v2233_v2  ;;  %v4175_v15 = vsub.f32 %v4588_v41, %v2233_v2  ;;  %v4179_v20 = vsub.f32 %v4589_v7, %v2233_v2  ;;  %v4183_v52 = vsub.f32 %v4590_v49, %v2233_v2 }
 0x270   :  { %v4591_v54 = vmax.f32 %v3929_v44, 0.0  ;;  %v4592_v23 = vmax.f32 %v3945_v56, 0.0  ;;  %v4594_v55 = vmax.f32 %v4031_v19, 0.0  ;;  %v4596_v4 = vmax.f32 %v4035_v43, 0.0 }
 0x271   :  { %v2394_v41 = vmul.f32 %v4089_v32, %v4089_v32  ;;  %v2430_v25 = vadd.f32 %v2429_v10, %v2391_v48  ;;  %v2380_v44 = vmul.f32 %v4137_v58, %v4137_v58  ;;  %v2383_v56 = vmul.f32 %v4141_v37, %v4141_v37 }
 0x272   :  { %v4189_v18 = vsub.f32 %v4591_v54, %v2233_v2  ;;  %v4193_v53 = vsub.f32 %v4592_v23, %v2233_v2  ;;  %v4197_v17 = vsub.f32 %v4594_v55, %v2233_v2  ;;  %v4201_v45 = vsub.f32 %v4596_v4, %v2233_v2 }
 0x273   :  { %v2397_v59 = vmul.f32 %v4093_v34, %v4093_v34  ;;  %v2431_v19 = vadd.f32 %v2430_v25, %v2394_v41  ;;  %v2400_v7 = vmul.f32 %v4097_v11, %v4097_v11  ;;  %v2386_v2 = vmul.f32 %v4145_v63, %v4145_v63 }
 0x274   :  { %4593 = vst [vmem:[#allocation20_spill] sm:$0xff] %v4193_v53  ;;  %4595 = vst [vmem:[#allocation21_spill] sm:$0xff] %v4197_v17  ;;  %v2448_v49 = vadd.f32 %v2383_v56, %v2380_v44  ;;  %v2403_v48 = vmul.f32 %v4101_v36, %v4101_v36  ;;  %v2389_v54 = vmul.f32 %v4149_v22, %v4149_v22 }
 0x275   :  { %v2432_v43 = vadd.f32 %v2431_v19, %v2397_v59  ;;  %v2406_v55 = vmul.f32 %v4105_v31, %v4105_v31  ;;  %v2392_v41 = vmul.f32 %v4153_v33, %v4153_v33  ;;  %v2409_v59 = vmul.f32 %v4109_v46, %v4109_v46 }
 0x276   :  { %v2449_v23 = vadd.f32 %v2448_v49, %v2386_v2  ;;  %v2395_v56 = vmul.f32 %v4157_v24, %v4157_v24  ;;  %v2398_v2 = vmul.f32 %v4163_v60, %v4163_v60 }
 0x277   :  { %v2433_v10 = vadd.f32 %v2432_v43, %v2400_v7  ;;  %v2412_v7 = vmul.f32 %v4113_v27, %v4113_v27 }
 0x278   :  { %v2450_v25 = vadd.f32 %v2449_v23, %v2389_v54  ;;  %v2401_v54 = vmul.f32 %v4167_v50, %v4167_v50 }
 0x279   :  { %v2434_v4 = vadd.f32 %v2433_v10, %v2403_v48  ;;  %v2415_v48 = vmul.f32 %v4117_v28, %v4117_v28 }
 0x27a   :  { %v2451_v19 = vadd.f32 %v2450_v25, %v2392_v41  ;;  %v2404_v41 = vmul.f32 %v4171_v5, %v4171_v5 }
 0x27b   :  { %v2435_v44 = vadd.f32 %v2434_v4, %v2406_v55  ;;  %v2418_v55 = vmul.f32 %v4121_v39, %v4121_v39 }
 0x27c   :  { %v2452_v49 = vadd.f32 %v2451_v19, %v2395_v56  ;;  %v2407_v19 = vmul.f32 %v4175_v15, %v4175_v15 }
 0x27d   :  { %v2436_v43 = vadd.f32 %v2435_v44, %v2409_v59  ;;  %v2484_v59 = vrot.slane %v4127_v47, 4  ;;  %v2421_v44 = vmul.f32 %v4123_v40, %v4123_v40 }
 0x27e   :  { %v2453_v23 = vadd.f32 %v2452_v49, %v2398_v2  ;;  %v2410_v49 = vmul.f32 %v4179_v20, %v4179_v20 }
 0x27f   :  { %v2437_v10 = vadd.f32 %v2436_v43, %v2412_v7  ;;  %v2424_v43 = vmul.f32 %v4125_v29, %v4125_v29 }
 0x280   :  { %v2454_v25 = vadd.f32 %v2453_v23, %v2401_v54  ;;  %v2413_v23 = vmul.f32 %v4183_v52, %v4183_v52 }
 0x281   :  { %v2438_v4 = vadd.f32 %v2437_v10, %v2415_v48  ;;  %v2485_v10 = vadd.f32 %v2484_v59, %v4127_v47  ;;  %v2422_v47 = vmul.f32 %v4197_v17, %v4197_v17 }
 0x282   :  { %v2455_v7 = vadd.f32 %v2454_v25, %v2404_v41 }
 0x283   :  { %v2439_v56 = vadd.f32 %v2438_v4, %v2418_v55  ;;  %v2416_v4 = vmul.f32 %v4189_v18, %v4189_v18  ;;  %v2486_v25 = vrot.slane %v2485_v10, 2 }
 0x284   :  { %v2456_v48 = vadd.f32 %v2455_v7, %v2407_v19 }
 0x285   :  { %v2440_v2 = vadd.f32 %v2439_v56, %v2421_v44  ;;  %v2419_v44 = vmul.f32 %v4193_v53, %v4193_v53  ;;  %v2487_v19 = vadd.f32 %v2486_v25, %v2485_v10  ;;  %v3395_v25 = vmov 1966171168  }
 0x286   :  { %v2457_v38 = vadd.f32 %v2456_v48, %v2410_v49 }
 0x287   :  { %v2441_v54 = vadd.f32 %v2440_v2, %v2424_v43  ;;  %v2425_v43 = vmul.f32 %v4201_v45, %v4201_v45 }
 0x288   :  { %v2458_v41 = vadd.f32 %v2457_v38, %v2413_v23  ;;  %v2488_v38 = vrot.slane %v2487_v19, 1 }
 0x289   :  { %v2442_v55 = vrot.slane %v2441_v54, 4 }
 0x28a   :  { %v2459_v56 = vadd.f32 %v2458_v41, %v2416_v4  ;;  %v2489_v40 = vadd.f32 %v2488_v38, %v2487_v19  ;;  %v1910_v38 = vld [vmem:[#allocation8 + $0x1] ss:$4 sm:$0x7] }
 0x28b   :  { %v2443_v16 = vadd.f32 %v2442_v55, %v2441_v54 }
 0x28c   :  { %v2460_v59 = vadd.f32 %v2459_v56, %v2419_v44  ;;  %v2492_v53 = vmul.f32 0.0078125, %v2489_v40  ;;  %v2504_v56 = vunpack.c.l.s4 %v3395_v25 }
 0x28d   :  { %v2444_v29 = vrot.slane %v2443_v16, 2 }
 0x28e   :  { %v2461_v2 = vadd.f32 %v2460_v59, %v2422_v47  ;;  %v2495_v10 = vadd.f32 1e-05, %v2492_v53  ;;  %v2505_v47 = vunpack.c.0.s8 %v2504_v56  ;;  %v1912_v53 = vld [vmem:[#allocation8 + $0x2] ss:$4 sm:$0x7] }
 0x28f   :  { %v2445_v7 = vadd.f32 %v2444_v29, %v2443_v16 }
 0x290   :  { %v2462_v48 = vadd.f32 %v2461_v2, %v2425_v43  ;;  %v4597_v43 = vld [vmem:[#allocation15_spill] sm:$0xff] }
 0x291   :  { %v2446_v49 = vrot.slane %v2445_v7, 1  ;;  %v2508_v19 = vsub.s32 %v2505_v47, %v4597_v43  ;;  %v4601_v43 = vld [vmem:[#allocation22_spill] sm:$0xff] }
 0x292   :  { %v2463_v23 = vrot.slane %v2462_v48, 4 }
 0x293   :  { %v2447_v54 = vadd.f32 %v2446_v49, %v2445_v7 }
 0x294   :  { %v2464_v55 = vadd.f32 %v2463_v23, %v2462_v48 }
 0x295   :  { %v2490_v4 = vmul.f32 0.0078125, %v2447_v54 }
 0x296   :  { %v2465_v61 = vrot.slane %v2464_v55, 2 }
 0x297   :  { %v2493_v17 = vadd.f32 1e-05, %v2490_v4 }
 0x298   :  { %v2466_v41 = vadd.f32 %v2465_v61, %v2464_v55  ;;  %v4599_v55 = vld [vmem:[#allocation17_spill] sm:$0xff] }
 0x299   :  { %3290 = vrsqrt.f32 %v2493_v17  ;;  %v4598_v17 = vld [vmem:[#allocation16_spill] sm:$0xff] }
 0x29a   :  { %v2467_v39 = vrot.slane %v2466_v41, 1  ;;  %3292 = vrsqrt.f32 %v2495_v10  ;;  %v4264_v10 = vrot.slane %v1912_v53, %v4598_v17 }
 0x29c   :  { %v2468_v44 = vadd.f32 %v2467_v39, %v2466_v41  ;;  %v4600_v41 = vld [vmem:[#allocation18_spill] sm:$0xff] }
 0x29e   :  { %v2491_v16 = vmul.f32 0.0078125, %v2468_v44 }
 0x2a0   :  { %v2494_v29 = vadd.f32 1e-05, %v2491_v16  ;;  %v4267_v16 = vrot.slane %v1912_v53, %v4599_v55 }
 0x2a2   :  { %3294 = vrsqrt.f32 %v2494_v29  ;;  %v4270_v29 = vrot.slane %v1912_v53, %v4600_v41 }
 0x2a3   :  { %v3291_v59 = vpop.eup %3290 }
 0x2a4   :  { %v3293_v7 = vpop.eup %3292 }
 0x2a5   :  { %v2516_v61 = vrot.slane %v3293_v7, %v2508_v19 }
 0x2ac   :  { %v3295_v2 = vpop.eup %3294 }
 0x2ad   :  { %v2502_v49 = vcombine.low %v3291_v59, %v3295_v2 }
 0x2af   :  { %v2509_v40 = vrot.slane %v2502_v49, %v2508_v19 }
 0x2b1   :  { %v2517_v48 = vcombine.low %v2509_v40, %v2516_v61 }
 0x2b3   :  { %v2524_v39 = vrot.slane %v2517_v48, %v2508_v19 }
 0x2b5   :  { %v2526_v23 = vmul.f32 %v2524_v39, %v1910_v38 }
 0x2b7   :  { %v2531_v54 = vrot.slane %v2526_v23, %v4598_v17  ;;  %v2535_v4 = vrot.slane %v2526_v23, %v4599_v55  ;;  %v2539_v44 = vrot.slane %v2526_v23, %v4600_v41  ;;  %v4609_v55 = vld [vmem:[#allocation25_spill] sm:$0xff] }
 0x2b9   :  { %v2543_v25 = vmul.f32 %v2531_v54, %v4069_v62  ;;  %v2544_v56 = vmul.f32 %v2535_v4, %v4137_v58  ;;  %v2545_v47 = vmul.f32 %v2539_v44, %v3950_v9  ;;  %v2546_v59 = vmul.f32 %v2531_v54, %v4073_v21 }
 0x2ba   :  { %v2547_v7 = vmul.f32 %v2535_v4, %v4141_v37  ;;  %v2548_v19 = vmul.f32 %v2539_v44, %v4601_v43  ;;  %v2549_v2 = vmul.f32 %v2531_v54, %v4077_v26  ;;  %v2550_v49 = vmul.f32 %v2535_v4, %v4145_v63 }
 0x2bb   :  { %v2551_v61 = vmul.f32 %v2539_v44, %v3958_v51  ;;  %v2552_v40 = vmul.f32 %v2531_v54, %v4081_v1  ;;  %v2553_v62 = vmul.f32 %v2535_v4, %v4149_v22  ;;  %v2554_v58 = vmul.f32 %v2539_v44, %v3962_v0 }
 0x2bc   :  { %v2555_v9 = vmul.f32 %v2531_v54, %v4085_v30  ;;  %v2556_v21 = vmul.f32 %v2535_v4, %v4153_v33  ;;  %v2557_v37 = vmul.f32 %v2539_v44, %v3966_v35  ;;  %v2558_v48 = vmul.f32 %v2531_v54, %v4089_v32 }
 0x2bd   :  { %v2559_v26 = vmul.f32 %v2535_v4, %v4157_v24  ;;  %v2560_v63 = vmul.f32 %v2539_v44, %v3970_v57  ;;  %v2561_v51 = vmul.f32 %v2531_v54, %v4093_v34  ;;  %v2562_v1 = vmul.f32 %v2535_v4, %v4163_v60 }
 0x2be   :  { %v2563_v22 = vmul.f32 %v2539_v44, %v3974_v6  ;;  %v2564_v0 = vmul.f32 %v2531_v54, %v4097_v11  ;;  %v2565_v30 = vmul.f32 %v2535_v4, %v4167_v50  ;;  %v2566_v33 = vmul.f32 %v2539_v44, %v3978_v13 }
 0x2bf   :  { %v4297_v35 = vmul.f32 %v2531_v54, %v4101_v36  ;;  %v4300_v32 = vmul.f32 %v2535_v4, %v4171_v5  ;;  %v4303_v57 = vmul.f32 %v2539_v44, %v3982_v14  ;;  %v4306_v34 = vmul.f32 %v2531_v54, %v4105_v31 }
 0x2c0   :  { %v4309_v6 = vmul.f32 %v2535_v4, %v4175_v15  ;;  %v4312_v11 = vmul.f32 %v2539_v44, %v3986_v3  ;;  %v4315_v13 = vmul.f32 %v2531_v54, %v4109_v46  ;;  %v4318_v36 = vmul.f32 %v2535_v4, %v4179_v20  ;;  %v4604_v20 = vld [vmem:[#allocation23_spill] sm:$0xff] }
 0x2c1   :  { %v4321_v24 = vmul.f32 %v2539_v44, %v3990_v12  ;;  %v4324_v14 = vmul.f32 %v2531_v54, %v4113_v27  ;;  %v4327_v31 = vmul.f32 %v2535_v4, %v4183_v52  ;;  %v4330_v60 = vmul.f32 %v2539_v44, %v3994_v42  ;;  %v4602_v12 = vld [vmem:[#allocation13_spill] sm:$0xff]  ;;  %v4603_v27 = vld [vmem:[#allocation20_spill] sm:$0xff]  ;;  %v4605_v42 = vld [vmem:[#allocation14_spill] sm:$0xff] }
 0x2c2   :  { %v4333_v3 = vmul.f32 %v2531_v54, %v4117_v28  ;;  %v4336_v46 = vmul.f32 %v2535_v4, %v4189_v18  ;;  %v4339_v50 = vmul.f32 %v2539_v44, %v3998_v8  ;;  %v4342_v5 = vmul.f32 %v2531_v54, %v4602_v12  ;;  %v4606_v28 = vld [vmem:[#allocation21_spill] sm:$0xff]  ;;  %v4607_v18 = vld [vmem:[#allocation24_spill] sm:$0xff]  ;;  %v4608_v8 = vld [vmem:[#allocation19_spill] sm:$0xff] }
 0x2c3   :  { %v4345_v15 = vmul.f32 %v2535_v4, %v4603_v27  ;;  %v4348_v52 = vmul.f32 %v2539_v44, %v4604_v20  ;;  %v4351_v38 = vmul.f32 %v2531_v54, %v4605_v42  ;;  %v4354_v39 = vmul.f32 %v2535_v4, %v4606_v28 }
 0x2c4   :  { %v4357_v53 = vmul.f32 %v2539_v44, %v4607_v18  ;;  %v4360_v23 = vmul.f32 %v2531_v54, %v4608_v8  ;;  %v4363_v17 = vmul.f32 %v2535_v4, %v4201_v45  ;;  %v4366_v41 = vmul.f32 %v2539_v44, %v4609_v55 }
 0x2c5   :  { %v2607_v43 = vadd.f32 %v4264_v10, %v2543_v25  ;;  %v2608_v12 = vadd.f32 %v4267_v16, %v2544_v56  ;;  %v2609_v27 = vadd.f32 %v4270_v29, %v2545_v47  ;;  %v2610_v20 = vadd.f32 %v4264_v10, %v2546_v59 }
 0x2c6   :  { %v2611_v42 = vadd.f32 %v4267_v16, %v2547_v7  ;;  %v2612_v28 = vadd.f32 %v4270_v29, %v2548_v19  ;;  %v2613_v54 = vadd.f32 %v4264_v10, %v2549_v2  ;;  %v2614_v45 = vadd.f32 %v4267_v16, %v2550_v49 }
 0x2c7   :  { %v2615_v4 = vadd.f32 %v4270_v29, %v2551_v61  ;;  %v2616_v44 = vadd.f32 %v4264_v10, %v2552_v40  ;;  %v2617_v25 = vadd.f32 %v4267_v16, %v2553_v62  ;;  %v2618_v56 = vadd.f32 %v4270_v29, %v2554_v58  ;;  %2655 = vst [vmem:[#allocation9] sm:$0xff] %v2607_v43 }
 0x2c8   :  { %2656 = vst [vmem:[#allocation9 + $0x8] sm:$0xff] %v2608_v12  ;;  %2657 = vst [vmem:[#allocation9 + $0x10] sm:$0xff] %v2609_v27  ;;  %v2619_v47 = vadd.f32 %v4264_v10, %v2555_v9  ;;  %v2620_v59 = vadd.f32 %v4267_v16, %v2556_v21  ;;  %v2621_v7 = vadd.f32 %v4270_v29, %v2557_v37 }
 0x2c9   :  { %2658 = vst [vmem:[#allocation9 + $0x18] sm:$0xff] %v2610_v20  ;;  %v2622_v19 = vadd.f32 %v4264_v10, %v2558_v48  ;;  %2659 = vst [vmem:[#allocation9 + $0x20] sm:$0xff] %v2611_v42  ;;  %v2623_v2 = vadd.f32 %v4267_v16, %v2559_v26  ;;  %v2624_v49 = vadd.f32 %v4270_v29, %v2560_v63 }
 0x2ca   :  { %2660 = vst [vmem:[#allocation9 + $0x28] sm:$0xff] %v2612_v28  ;;  %2661 = vst [vmem:[#allocation9 + $0x30] sm:$0xff] %v2613_v54  ;;  %v2625_v61 = vadd.f32 %v4264_v10, %v2561_v51  ;;  %v2626_v40 = vadd.f32 %v4267_v16, %v2562_v1  ;;  %v2627_v62 = vadd.f32 %v4270_v29, %v2563_v22 }
 0x2cb   :  { %2662 = vst [vmem:[#allocation9 + $0x38] sm:$0xff] %v2614_v45  ;;  %2663 = vst [vmem:[#allocation9 + $0x40] sm:$0xff] %v2615_v4  ;;  %v2628_v58 = vadd.f32 %v4264_v10, %v2564_v0  ;;  %v2629_v9 = vadd.f32 %v4267_v16, %v2565_v30  ;;  %v2630_v21 = vadd.f32 %v4270_v29, %v2566_v33 }
 0x2cc   :  { %2664 = vst [vmem:[#allocation9 + $0x48] sm:$0xff] %v2616_v44  ;;  %2665 = vst [vmem:[#allocation9 + $0x50] sm:$0xff] %v2617_v25  ;;  %v2631_v37 = vadd.f32 %v4264_v10, %v4297_v35  ;;  %v2632_v48 = vadd.f32 %v4267_v16, %v4300_v32  ;;  %v2633_v26 = vadd.f32 %v4270_v29, %v4303_v57 }
 0x2cd   :  { %2666 = vst [vmem:[#allocation9 + $0x58] sm:$0xff] %v2618_v56  ;;  %2667 = vst [vmem:[#allocation9 + $0x60] sm:$0xff] %v2619_v47  ;;  %v2634_v63 = vadd.f32 %v4264_v10, %v4306_v34  ;;  %v2635_v51 = vadd.f32 %v4267_v16, %v4309_v6  ;;  %v2636_v1 = vadd.f32 %v4270_v29, %v4312_v11 }
 0x2ce   :  { %2668 = vst [vmem:[#allocation9 + $0x68] sm:$0xff] %v2620_v59  ;;  %2669 = vst [vmem:[#allocation9 + $0x70] sm:$0xff] %v2621_v7  ;;  %v2637_v22 = vadd.f32 %v4264_v10, %v4315_v13  ;;  %v2638_v0 = vadd.f32 %v4267_v16, %v4318_v36  ;;  %v2639_v30 = vadd.f32 %v4270_v29, %v4321_v24 }
 0x2cf   :  { %2670 = vst [vmem:[#allocation9 + $0x78] sm:$0xff] %v2622_v19  ;;  %2671 = vst [vmem:[#allocation9 + $0x80] sm:$0xff] %v2623_v2  ;;  %v2640_v33 = vadd.f32 %v4264_v10, %v4324_v14  ;;  %v2641_v35 = vadd.f32 %v4267_v16, %v4327_v31  ;;  %v2642_v32 = vadd.f32 %v4270_v29, %v4330_v60 }
 0x2d0   :  { %2672 = vst [vmem:[#allocation9 + $0x88] sm:$0xff] %v2624_v49  ;;  %2673 = vst [vmem:[#allocation9 + $0x90] sm:$0xff] %v2625_v61  ;;  %v2643_v57 = vadd.f32 %v4264_v10, %v4333_v3  ;;  %v2644_v34 = vadd.f32 %v4267_v16, %v4336_v46  ;;  %v2645_v6 = vadd.f32 %v4270_v29, %v4339_v50 }
 0x2d1   :  { %2674 = vst [vmem:[#allocation9 + $0x98] sm:$0xff] %v2626_v40  ;;  %2675 = vst [vmem:[#allocation9 + $0xa0] sm:$0xff] %v2627_v62  ;;  %v2646_v11 = vadd.f32 %v4264_v10, %v4342_v5  ;;  %v2647_v13 = vadd.f32 %v4267_v16, %v4345_v15  ;;  %v2648_v36 = vadd.f32 %v4270_v29, %v4348_v52 }
 0x2d2   :  { %2676 = vst [vmem:[#allocation9 + $0xa8] sm:$0xff] %v2628_v58  ;;  %2677 = vst [vmem:[#allocation9 + $0xb0] sm:$0xff] %v2629_v9  ;;  %v2649_v24 = vadd.f32 %v4264_v10, %v4351_v38  ;;  %v2650_v14 = vadd.f32 %v4267_v16, %v4354_v39  ;;  %v2651_v31 = vadd.f32 %v4270_v29, %v4357_v53 }
 0x2d3   :  { %2678 = vst [vmem:[#allocation9 + $0xb8] sm:$0xff] %v2630_v21  ;;  %2679 = vst [vmem:[#allocation9 + $0xc0] sm:$0xff] %v2631_v37  ;;  %v2652_v60 = vadd.f32 %v4264_v10, %v4360_v23  ;;  %v2653_v3 = vadd.f32 %v4267_v16, %v4363_v17  ;;  %v2654_v46 = vadd.f32 %v4270_v29, %v4366_v41 }
 0x2d4   :  { %2680 = vst [vmem:[#allocation9 + $0xc8] sm:$0xff] %v2632_v48  ;;  %2681 = vst [vmem:[#allocation9 + $0xd0] sm:$0xff] %v2633_v26 }
 0x2d5   :  { %2682 = vst [vmem:[#allocation9 + $0xd8] sm:$0xff] %v2634_v63  ;;  %2683 = vst [vmem:[#allocation9 + $0xe0] sm:$0xff] %v2635_v51 }
 0x2d6   :  { %2684 = vst [vmem:[#allocation9 + $0xe8] sm:$0xff] %v2636_v1  ;;  %2685 = vst [vmem:[#allocation9 + $0xf0] sm:$0xff] %v2637_v22 }
 0x2d7   :  { %2686 = vst [vmem:[#allocation9 + $0xf8] sm:$0xff] %v2638_v0  ;;  %2687 = vst [vmem:[#allocation9 + $0x100] sm:$0xff] %v2639_v30 }
 0x2d8   :  { %2688 = vst [vmem:[#allocation9 + $0x108] sm:$0xff] %v2640_v33  ;;  %2689 = vst [vmem:[#allocation9 + $0x110] sm:$0xff] %v2641_v35 }
 0x2d9   :  { %2690 = vst [vmem:[#allocation9 + $0x118] sm:$0xff] %v2642_v32  ;;  %2691 = vst [vmem:[#allocation9 + $0x120] sm:$0xff] %v2643_v57 }
 0x2da   :  { %2692 = vst [vmem:[#allocation9 + $0x128] sm:$0xff] %v2644_v34  ;;  %2693 = vst [vmem:[#allocation9 + $0x130] sm:$0xff] %v2645_v6 }
 0x2db   :  { %2694 = vst [vmem:[#allocation9 + $0x138] sm:$0xff] %v2646_v11  ;;  %2695 = vst [vmem:[#allocation9 + $0x140] sm:$0xff] %v2647_v13 }
 0x2dc   :  { %2696 = vst [vmem:[#allocation9 + $0x148] sm:$0xff] %v2648_v36  ;;  %2697 = vst [vmem:[#allocation9 + $0x150] sm:$0xff] %v2649_v24 }
 0x2dd   :  { %2698 = vst [vmem:[#allocation9 + $0x158] sm:$0xff] %v2650_v14  ;;  %2699 = vst [vmem:[#allocation9 + $0x160] sm:$0xff] %v2651_v31 }
 0x2de   :  { %2700 = vst [vmem:[#allocation9 + $0x168] sm:$0xff] %v2652_v60  ;;  %2701 = vst [vmem:[#allocation9 + $0x170] sm:$0xff] %v2653_v3 }
 0x2df   :  { %2702 = vst [vmem:[#allocation9 + $0x178] sm:$0xff] %v2654_v46 }
 0x2e0   :  { %3373 = shalt.err (!%p3370_p0)
}
 0x2e1   :  { %s3374_s25 = scalar_lea.hbm %s4462_s3, 6144 }
 0x2e2   :  { %p3375_p1 = scmp.ne.s32.totalorder %s4462_s3, %s3374_s25  ;;  %p3378_p2 = scmp.lt.u32.totalorder %s3374_s25, %s4462_s3 }
 0x2e4   :  { %p3380_p3 = pnand %p3378_p2, %p3375_p1 }
 0x2e6   :  { %3383 = shalt.err (!%p3380_p3)
}
 0x2e7   :  { %s3397_s30 = smov 384   ;;  %s3398_s4 = smov 24  }
 0x2e8   :  { %2714 = dma.vmem_to_hbm [thread:$0]  %s4432_s21, 6144, %s4462_s3, [#allocation5], %s3397_s30, %s3397_s30, %s3398_s4  }
 0x2e9   :  { %3388 = dma.done.wait [#allocation5], 6144  }
 0x2ea   :  { %3389 = vsyncadd [#allocation5], 4294961152 }
 0x2eb   :  { %2718 = vsyncpa [#allocation4], 1 }
 0x2ec   :  { %2719 = vsyncpa [#allocation7], 1 }
 0x2ed   :  { %2720 = vsyncpa [#allocation5], 1 }

</bundles_post_ra>
